<compile_context>
chip_gen: v7x
topology: tpu7x:2x2x1
jax: 0.10.0
libtpu: 0.0.40
codegen_flags: <defaults>
</compile_context>

<pallas_src>
import functools

import jax
import jax.numpy as jnp
from jax import lax
from jax.experimental import pallas as pl
from jax.experimental.pallas import tpu as pltpu
import numpy as np

# ----------------------------- model hyperparams -----------------------------
INPUT_LEN = 16     # feature dim per timestep
HIDDEN = 32        # hidden_size
NUM_LAYERS = 2     # num_layers
NUM_CLASS = 10     # num_class
BATCH = 4
SEQ = 8

LANES = 128        # TPU lane width; equals 4*HIDDEN for this model
SUBLANES = 8       # f32 sublane height -> batch padded to 8


# --------------------------------- kernel ------------------------------------
def _lstm_kernel(x_ref, w_ref, b_ref, out_ref, gx0_ref, *, num_layers, hidden, seq):
    """Fused multi-layer LSTM forward + output projection (single invocation).

    x_ref  : (T, Bp, 128) f32    time-major input, features zero-padded to 128 lanes
    w_ref  : (L+2, 128, 128) bf16
             [0]=W_ih_0^T, [1]=W_hh_0^T, [2..L]=packed layer-l weights
             (rows [0,H)=W_ih^T, [H,2H)=W_hh^T, row 2H = b_ih+b_hh), [L+1]=W_out^T
    b_ref  : (2, 1, 128) f32     [b_layer0, b_out]
    out_ref: (Bp, 128) f32       lane-dense logits; cols >= num_class are zero
    gx0_ref: (T, Bp, 128) f32    VMEM scratch for the hoisted layer-0 projection
    """
    H = hidden
    G = 4 * H                      # == 128 lanes
    T = seq
    Bp = x_ref.shape[1]
    f32, bf16 = jnp.float32, jnp.bfloat16

    # ---- Hoisted per-lane constant vregs (built once; time loop is fully unrolled).
    lane = lax.broadcasted_iota(jnp.int32, (Bp, G), 1)
    is_g = (lane >= 2 * H) & (lane < 3 * H)            # g-gate block (order [i,f,g,o])
    pre = jnp.where(is_g, 1.0, 0.5).astype(f32)        # tanh pre-scale
    scale = jnp.where(is_g, 1.0, 0.5).astype(f32)      # post-scale
    off = jnp.where(is_g, 0.0, 0.5).astype(f32)        # post-offset
    h_mask = (lane < H).astype(f32)                    # keep only valid h lanes [0,H)
    bias_one = (lane == 2 * H).astype(f32)             # drives packed-bias row 2H

    def activate(gates):
        # sigmoid(x)=0.5*tanh(0.5x)+0.5 and tanh(x) fused into ONE full-vreg EUP tanh.
        return jnp.tanh(gates * pre) * scale + off

    def cell(gates, c):
        act = activate(gates)                          # (Bp, 4H), valid everywhere
        i_g = act                                      # i already at lanes [0, H)
        f_g = pltpu.roll(act, 3 * H, 1)                # f -> lanes [0, H)  (XLU slot)
        g_g = pltpu.roll(act, 2 * H, 1)                # g -> lanes [0, H)
        o_g = pltpu.roll(act, 1 * H, 1)                # o -> lanes [0, H)
        c_new = f_g * c + i_g * g_g                    # valid in [0,H); rest bounded junk
        h_new = h_mask * (o_g * jnp.tanh(c_new))       # mask: packed weights need clean h
        return h_new, c_new

    # ---- Hoisted layer-0 input projection + bias: ONE matmul for all timesteps,
    #      stashed in VMEM scratch to bound vreg pressure of the unrolled loop.
    x_all = x_ref[...].reshape(T * Bp, LANES).astype(bf16)
    gx0 = jnp.dot(x_all, w_ref[0], preferred_element_type=f32) + b_ref[0]
    gx0_ref[...] = gx0.reshape(T, Bp, G)

    zeros = jnp.zeros((Bp, G), f32)
    h = [zeros] * num_layers
    c = [zeros] * num_layers

    # ---- Fully unrolled time loop (T small & static) so layer-0 step t+1 can be
    #      scheduled under layer-1 step t.
    for t in range(T):
        # Layer 0: only the recurrent dot remains on the serial chain.
        gates = gx0_ref[t] + jnp.dot(h[0].astype(bf16), w_ref[1],
                                     preferred_element_type=f32)
        h[0], c[0] = cell(gates, c[0])
        # Layers >= 1: single packed dot (W_ih | W_hh | bias fused in one 128x128 RHS).
        for l in range(1, num_layers):
            lhs = h[l - 1] + pltpu.roll(h[l], H, 1) + bias_one
            gates = jnp.dot(lhs.astype(bf16), w_ref[l + 1],
                            preferred_element_type=f32)
            h[l], c[l] = cell(gates, c[l])

    # ---- Output projection on the last timestep; lane-dense (Bp, 128) store.
    out_ref[...] = (jnp.dot(h[num_layers - 1].astype(bf16), w_ref[num_layers + 1],
                            preferred_element_type=f32)
                    + b_ref[1])


# ----------------------------- one-time weight prep ----------------------------
def _pad2d(a, rows, cols):
    out = jnp.zeros((rows, cols), jnp.float32)
    return out.at[: a.shape[0], : a.shape[1]].set(jnp.asarray(a, jnp.float32))


def prepare_params(params, *, num_layers=NUM_LAYERS):
    """Transpose + zero-pad + K-pack all weights once (out of the per-call hot path)."""
    assert 4 * HIDDEN == LANES, "kernel layout assumes 4*hidden == 128 lanes"
    H = HIDDEN
    ws = [
        _pad2d(jnp.asarray(params["w_ih_l0"]).T, LANES, LANES),   # (D_in,4H) -> pad
        _pad2d(jnp.asarray(params["w_hh_l0"]).T, LANES, LANES),   # (H,  4H) -> pad
    ]
    b0 = jnp.asarray(params["b_ih_l0"]) + jnp.asarray(params["b_hh_l0"])
    bs = [_pad2d(b0.reshape(1, -1), 1, LANES)]
    # Layers >= 1: pack [W_ih ; W_hh ; bias] into one 128x128 RHS.
    for l in range(1, num_layers):
        w = jnp.zeros((LANES, LANES), jnp.float32)
        w = w.at[:H, : 4 * H].set(jnp.asarray(params[f"w_ih_l{l}"], jnp.float32).T)
        w = w.at[H: 2 * H, : 4 * H].set(jnp.asarray(params[f"w_hh_l{l}"], jnp.float32).T)
        bl = jnp.asarray(params[f"b_ih_l{l}"]) + jnp.asarray(params[f"b_hh_l{l}"])
        w = w.at[2 * H, : 4 * H].set(bl.astype(jnp.float32))
        ws.append(w)
    ws.append(_pad2d(jnp.asarray(params["w_out"]).T, LANES, LANES))      # (H,C) -> pad
    bs.append(_pad2d(jnp.asarray(params["b_out"]).reshape(1, -1), 1, LANES))
    w_stack = jnp.stack(ws).astype(jnp.bfloat16)      # (L+2,128,128) bf16 (single-pass MXU)
    b_stack = jnp.stack(bs)                           # (2,1,128) f32
    return w_stack, b_stack


# -------------------------------- forward wrapper -------------------------------
@jax.jit
def action_lstm_forward(x_btd, w_stack, b_stack):
    """x_btd: (B, T, input_len) float32 (batch_first). Returns (B, num_class) logits."""
    B, T, D = x_btd.shape
    Bp = SUBLANES
    assert B <= Bp and D <= LANES
    # Time-major, batch padded to sublane height, features padded lane-dense.
    # (Small tensor; XLA fuses transpose+pad.  For larger deployments, accept a
    #  time-major padded layout upstream to drop these two HLOs entirely.)
    x_tbd = jnp.transpose(x_btd.astype(jnp.float32), (1, 0, 2))
    x_pad = jnp.zeros((T, Bp, LANES), jnp.float32).at[:, :B, :D].set(x_tbd)

    kernel = functools.partial(_lstm_kernel, num_layers=NUM_LAYERS, hidden=HIDDEN, seq=T)
    out_pad = pl.pallas_call(
        kernel,
        out_shape=jax.ShapeDtypeStruct((Bp, LANES), jnp.float32),
        in_specs=[pl.BlockSpec(memory_space=pltpu.MemorySpace.VMEM)] * 3,
        out_specs=pl.BlockSpec(memory_space=pltpu.MemorySpace.VMEM),
        scratch_shapes=[pltpu.VMEM((T, Bp, LANES), jnp.float32)],
    )(x_pad, w_stack, b_stack)
    return out_pad[:B, :NUM_CLASS]


# ---------------------------- pure-JAX reference -------------------------------
def _reference_forward(x_btd, params):
    B, T, D = x_btd.shape
    h = [jnp.zeros((B, HIDDEN), jnp.float32) for _ in range(NUM_LAYERS)]
    c = [jnp.zeros((B, HIDDEN), jnp.float32) for _ in range(NUM_LAYERS)]
    for t in range(T):
        layer_in = x_btd[:, t, :]
        for l in range(NUM_LAYERS):
            w_ih = params[f"w_ih_l{l}"]
            w_hh = params[f"w_hh_l{l}"]
            b = params[f"b_ih_l{l}"] + params[f"b_hh_l{l}"]
            gates = layer_in @ w_ih.T + h[l] @ w_hh.T + b
            i = jax.nn.sigmoid(gates[:, 0 * HIDDEN:1 * HIDDEN])
            f = jax.nn.sigmoid(gates[:, 1 * HIDDEN:2 * HIDDEN])
            g = jnp.tanh(gates[:, 2 * HIDDEN:3 * HIDDEN])
            o = jax.nn.sigmoid(gates[:, 3 * HIDDEN:4 * HIDDEN])
            c[l] = f * c[l] + i * g
            h[l] = o * jnp.tanh(c[l])
            layer_in = h[l]
    return h[-1] @ params["w_out"].T + params["b_out"]


# ---------------------------------- main ---------------------------------------
if __name__ == "__main__":
    key = jax.random.PRNGKey(0)
    k_x, k_p = jax.random.split(key)

    # Deterministic parameter init (PyTorch-style U(-1/sqrt(H), 1/sqrt(H))).
    bound = 1.0 / np.sqrt(HIDDEN)
    params = {}
    pkeys = jax.random.split(k_p, 4 * NUM_LAYERS + 2)
    ki = 0
    for l in range(NUM_LAYERS):
        d_in = INPUT_LEN if l == 0 else HIDDEN
        params[f"w_ih_l{l}"] = jax.random.uniform(
            pkeys[ki], (4 * HIDDEN, d_in), jnp.float32, -bound, bound); ki += 1
        params[f"w_hh_l{l}"] = jax.random.uniform(
            pkeys[ki], (4 * HIDDEN, HIDDEN), jnp.float32, -bound, bound); ki += 1
        params[f"b_ih_l{l}"] = jax.random.uniform(
            pkeys[ki], (4 * HIDDEN,), jnp.float32, -bound, bound); ki += 1
        params[f"b_hh_l{l}"] = jax.random.uniform(
            pkeys[ki], (4 * HIDDEN,), jnp.float32, -bound, bound); ki += 1
    params["w_out"] = jax.random.uniform(
        pkeys[ki], (NUM_CLASS, HIDDEN), jnp.float32, -bound, bound); ki += 1
    params["b_out"] = jax.random.uniform(
        pkeys[ki], (NUM_CLASS,), jnp.float32, -bound, bound); ki += 1

    x = jax.random.normal(k_x, (BATCH, SEQ, INPUT_LEN), jnp.float32)

    w_stack, b_stack = prepare_params(params)          # one-time packing
    out = jax.block_until_ready(action_lstm_forward(x, w_stack, b_stack))
    ref = jax.block_until_ready(_reference_forward(x, params))

    assert out.shape == (BATCH, NUM_CLASS)
    # Tolerance accounts for bf16 MXU operands (single-pass matmul path).
    np.testing.assert_allclose(np.asarray(out), np.asarray(ref), atol=2e-2, rtol=2e-2)
    print("KERNEL_OK")
</pallas_src>

<mosaic_0001>
module attributes {stable_mosaic.version = 11 : i64} {
  func.func @_lstm_kernel(%arg0: memref<8x8x128xf32, #tpu.memory_space<vmem>>, %arg1: memref<4x128x128xbf16, #tpu.memory_space<vmem>>, %arg2: memref<2x1x128xf32, #tpu.memory_space<vmem>>, %arg3: memref<8x128xf32, #tpu.memory_space<vmem>>, %arg4: memref<8x8x128xf32, #tpu.memory_space<vmem>>) attributes {dimension_semantics = [], scalar_prefetch = 0 : i64, scratch_operands = 1 : i64, tpu.core_type = #tpu.core_type<tc>} {
    %0 = tpu.iota {dimensions = array<i32: 1>} : vector<8x128xi32>
    %c64_i32 = arith.constant 64 : i32
    %1 = vector.broadcast %c64_i32 : i32 to vector<8x128xi32>
    %2 = arith.cmpi sge, %0, %1 : vector<8x128xi32>
    %c96_i32 = arith.constant 96 : i32
    %3 = vector.broadcast %c96_i32 : i32 to vector<8x128xi32>
    %4 = arith.cmpi slt, %0, %3 : vector<8x128xi32>
    %5 = arith.andi %2, %4 : vector<8x128xi1>
    %cst = arith.constant 1.000000e+00 : f32
    %cst_0 = arith.constant 5.000000e-01 : f32
    %6 = vector.broadcast %cst : f32 to vector<8x128xf32>
    %7 = vector.broadcast %cst_0 : f32 to vector<8x128xf32>
    %8 = arith.select %5, %6, %7 : vector<8x128xi1>, vector<8x128xf32>
    %cst_1 = arith.constant 1.000000e+00 : f32
    %cst_2 = arith.constant 5.000000e-01 : f32
    %9 = vector.broadcast %cst_1 : f32 to vector<8x128xf32>
    %10 = vector.broadcast %cst_2 : f32 to vector<8x128xf32>
    %11 = arith.select %5, %9, %10 : vector<8x128xi1>, vector<8x128xf32>
    %cst_3 = arith.constant 0.000000e+00 : f32
    %cst_4 = arith.constant 5.000000e-01 : f32
    %12 = vector.broadcast %cst_3 : f32 to vector<8x128xf32>
    %13 = vector.broadcast %cst_4 : f32 to vector<8x128xf32>
    %14 = arith.select %5, %12, %13 : vector<8x128xi1>, vector<8x128xf32>
    %c32_i32 = arith.constant 32 : i32
    %15 = vector.broadcast %c32_i32 : i32 to vector<8x128xi32>
    %16 = arith.cmpi slt, %0, %15 : vector<8x128xi32>
    %17 = arith.extui %16 : vector<8x128xi1> to vector<8x128xi32>
    %18 = arith.sitofp %17 : vector<8x128xi32> to vector<8x128xf32>
    %c64_i32_5 = arith.constant 64 : i32
    %19 = vector.broadcast %c64_i32_5 : i32 to vector<8x128xi32>
    %20 = arith.cmpi eq, %0, %19 : vector<8x128xi32>
    %21 = arith.extui %20 : vector<8x128xi1> to vector<8x128xi32>
    %22 = arith.sitofp %21 : vector<8x128xi32> to vector<8x128xf32>
    %c0 = arith.constant 0 : index
    %c0_6 = arith.constant 0 : index
    %c0_7 = arith.constant 0 : index
    %23 = vector.load %arg0[%c0, %c0_6, %c0_7] : memref<8x8x128xf32, #tpu.memory_space<vmem>>, vector<8x8x128xf32>
    %24 = vector.shape_cast %23 : vector<8x8x128xf32> to vector<64x128xf32>
    %25 = arith.truncf %24 : vector<64x128xf32> to vector<64x128xbf16>
    %c0_8 = arith.constant 0 : index
    %c0_9 = arith.constant 0 : index
    %c0_10 = arith.constant 0 : index
    %26 = vector.load %arg1[%c0_8, %c0_9, %c0_10] : memref<4x128x128xbf16, #tpu.memory_space<vmem>>, vector<1x128x128xbf16>
    %27 = vector.shape_cast %26 : vector<1x128x128xbf16> to vector<128x128xbf16>
    %cst_11 = arith.constant dense<0.000000e+00> : vector<64x128xf32>
    %28 = tpu.matmul %25, %27, %cst_11 {dimension_numbers = #tpu.dot_dimension_numbers<[1], [0], [0], [1], [0, 0, 1, 1], [], []>} : vector<64x128xbf16>, vector<128x128xbf16>, vector<64x128xf32> -> vector<64x128xf32>
    %c0_12 = arith.constant 0 : index
    %c0_13 = arith.constant 0 : index
    %c0_14 = arith.constant 0 : index
    %29 = vector.load %arg2[%c0_12, %c0_13, %c0_14] : memref<2x1x128xf32, #tpu.memory_space<vmem>>, vector<1x1x128xf32>
    %30 = vector.shape_cast %29 : vector<1x1x128xf32> to vector<1x128xf32>
    %31 = vector.broadcast %30 : vector<1x128xf32> to vector<64x128xf32>
    %32 = arith.addf %28, %31 : vector<64x128xf32>
    %33 = vector.shape_cast %32 : vector<64x128xf32> to vector<8x8x128xf32>
    %c0_15 = arith.constant 0 : index
    %c0_16 = arith.constant 0 : index
    %c0_17 = arith.constant 0 : index
    %34 = vector.load %arg4[%c0_15, %c0_16, %c0_17] : memref<8x8x128xf32, #tpu.memory_space<vmem>>, vector<8x8x128xf32>
    tpu.vector_store %arg4[%c0_15, %c0_16, %c0_17], %33 {strides = array<i32>} : memref<8x8x128xf32, #tpu.memory_space<vmem>>, vector<8x8x128xf32>,
    %cst_18 = arith.constant 0.000000e+00 : f32
    %35 = vector.broadcast %cst_18 : f32 to vector<8x128xf32>
    %c0_19 = arith.constant 0 : index
    %c0_20 = arith.constant 0 : index
    %c0_21 = arith.constant 0 : index
    %36 = vector.load %arg4[%c0_19, %c0_20, %c0_21] : memref<8x8x128xf32, #tpu.memory_space<vmem>>, vector<1x8x128xf32>
    %37 = vector.shape_cast %36 : vector<1x8x128xf32> to vector<8x128xf32>
    %38 = arith.truncf %35 : vector<8x128xf32> to vector<8x128xbf16>
    %c1 = arith.constant 1 : index
    %c0_22 = arith.constant 0 : index
    %c0_23 = arith.constant 0 : index
    %39 = vector.load %arg1[%c1, %c0_22, %c0_23] : memref<4x128x128xbf16, #tpu.memory_space<vmem>>, vector<1x128x128xbf16>
    %40 = vector.shape_cast %39 : vector<1x128x128xbf16> to vector<128x128xbf16>
    %cst_24 = arith.constant dense<0.000000e+00> : vector<8x128xf32>
    %41 = tpu.matmul %38, %40, %cst_24 {dimension_numbers = #tpu.dot_dimension_numbers<[1], [0], [0], [1], [0, 0, 1, 1], [], []>} : vector<8x128xbf16>, vector<128x128xbf16>, vector<8x128xf32> -> vector<8x128xf32>
    %42 = arith.addf %37, %41 : vector<8x128xf32>
    %43 = arith.mulf %42, %8 : vector<8x128xf32>
    %44 = math.tanh %43 : vector<8x128xf32>
    %45 = arith.mulf %44, %11 : vector<8x128xf32>
    %46 = arith.addf %45, %14 : vector<8x128xf32>
    %c96_i32_25 = arith.constant 96 : i32
    %47 = tpu.dynamic_rotate %46 by %c96_i32_25 dim 1 : vector<8x128xf32>, i32 -> vector<8x128xf32>
    %c64_i32_26 = arith.constant 64 : i32
    %48 = tpu.dynamic_rotate %46 by %c64_i32_26 dim 1 : vector<8x128xf32>, i32 -> vector<8x128xf32>
    %c32_i32_27 = arith.constant 32 : i32
    %49 = tpu.dynamic_rotate %46 by %c32_i32_27 dim 1 : vector<8x128xf32>, i32 -> vector<8x128xf32>
    %50 = arith.mulf %47, %35 : vector<8x128xf32>
    %51 = arith.mulf %46, %48 : vector<8x128xf32>
    %52 = arith.addf %50, %51 : vector<8x128xf32>
    %53 = math.tanh %52 : vector<8x128xf32>
    %54 = arith.mulf %49, %53 : vector<8x128xf32>
    %55 = arith.mulf %18, %54 : vector<8x128xf32>
    %c32_i32_28 = arith.constant 32 : i32
    %56 = tpu.dynamic_rotate %35 by %c32_i32_28 dim 1 : vector<8x128xf32>, i32 -> vector<8x128xf32>
    %57 = arith.addf %55, %56 : vector<8x128xf32>
    %58 = arith.addf %57, %22 : vector<8x128xf32>
    %59 = arith.truncf %58 : vector<8x128xf32> to vector<8x128xbf16>
    %c2 = arith.constant 2 : index
    %c0_29 = arith.constant 0 : index
    %c0_30 = arith.constant 0 : index
    %60 = vector.load %arg1[%c2, %c0_29, %c0_30] : memref<4x128x128xbf16, #tpu.memory_space<vmem>>, vector<1x128x128xbf16>
    %61 = vector.shape_cast %60 : vector<1x128x128xbf16> to vector<128x128xbf16>
    %cst_31 = arith.constant dense<0.000000e+00> : vector<8x128xf32>
    %62 = tpu.matmul %59, %61, %cst_31 {dimension_numbers = #tpu.dot_dimension_numbers<[1], [0], [0], [1], [0, 0, 1, 1], [], []>} : vector<8x128xbf16>, vector<128x128xbf16>, vector<8x128xf32> -> vector<8x128xf32>
    %63 = arith.mulf %62, %8 : vector<8x128xf32>
    %64 = math.tanh %63 : vector<8x128xf32>
    %65 = arith.mulf %64, %11 : vector<8x128xf32>
    %66 = arith.addf %65, %14 : vector<8x128xf32>
    %c96_i32_32 = arith.constant 96 : i32
    %67 = tpu.dynamic_rotate %66 by %c96_i32_32 dim 1 : vector<8x128xf32>, i32 -> vector<8x128xf32>
    %c64_i32_33 = arith.constant 64 : i32
    %68 = tpu.dynamic_rotate %66 by %c64_i32_33 dim 1 : vector<8x128xf32>, i32 -> vector<8x128xf32>
    %c32_i32_34 = arith.constant 32 : i32
    %69 = tpu.dynamic_rotate %66 by %c32_i32_34 dim 1 : vector<8x128xf32>, i32 -> vector<8x128xf32>
    %70 = arith.mulf %67, %35 : vector<8x128xf32>
    %71 = arith.mulf %66, %68 : vector<8x128xf32>
    %72 = arith.addf %70, %71 : vector<8x128xf32>
    %73 = math.tanh %72 : vector<8x128xf32>
    %74 = arith.mulf %69, %73 : vector<8x128xf32>
    %75 = arith.mulf %18, %74 : vector<8x128xf32>
    %c1_35 = arith.constant 1 : index
    %c0_36 = arith.constant 0 : index
    %c0_37 = arith.constant 0 : index
    %76 = vector.load %arg4[%c1_35, %c0_36, %c0_37] : memref<8x8x128xf32, #tpu.memory_space<vmem>>, vector<1x8x128xf32>
    %77 = vector.shape_cast %76 : vector<1x8x128xf32> to vector<8x128xf32>
    %78 = arith.truncf %55 : vector<8x128xf32> to vector<8x128xbf16>
    %c1_38 = arith.constant 1 : index
    %c0_39 = arith.constant 0 : index
    %c0_40 = arith.constant 0 : index
    %79 = vector.load %arg1[%c1_38, %c0_39, %c0_40] : memref<4x128x128xbf16, #tpu.memory_space<vmem>>, vector<1x128x128xbf16>
    %80 = vector.shape_cast %79 : vector<1x128x128xbf16> to vector<128x128xbf16>
    %cst_41 = arith.constant dense<0.000000e+00> : vector<8x128xf32>
    %81 = tpu.matmul %78, %80, %cst_41 {dimension_numbers = #tpu.dot_dimension_numbers<[1], [0], [0], [1], [0, 0, 1, 1], [], []>} : vector<8x128xbf16>, vector<128x128xbf16>, vector<8x128xf32> -> vector<8x128xf32>
    %82 = arith.addf %77, %81 : vector<8x128xf32>
    %83 = arith.mulf %82, %8 : vector<8x128xf32>
    %84 = math.tanh %83 : vector<8x128xf32>
    %85 = arith.mulf %84, %11 : vector<8x128xf32>
    %86 = arith.addf %85, %14 : vector<8x128xf32>
    %c96_i32_42 = arith.constant 96 : i32
    %87 = tpu.dynamic_rotate %86 by %c96_i32_42 dim 1 : vector<8x128xf32>, i32 -> vector<8x128xf32>
    %c64_i32_43 = arith.constant 64 : i32
    %88 = tpu.dynamic_rotate %86 by %c64_i32_43 dim 1 : vector<8x128xf32>, i32 -> vector<8x128xf32>
    %c32_i32_44 = arith.constant 32 : i32
    %89 = tpu.dynamic_rotate %86 by %c32_i32_44 dim 1 : vector<8x128xf32>, i32 -> vector<8x128xf32>
    %90 = arith.mulf %87, %52 : vector<8x128xf32>
    %91 = arith.mulf %86, %88 : vector<8x128xf32>
    %92 = arith.addf %90, %91 : vector<8x128xf32>
    %93 = math.tanh %92 : vector<8x128xf32>
    %94 = arith.mulf %89, %93 : vector<8x128xf32>
    %95 = arith.mulf %18, %94 : vector<8x128xf32>
    %c32_i32_45 = arith.constant 32 : i32
    %96 = tpu.dynamic_rotate %75 by %c32_i32_45 dim 1 : vector<8x128xf32>, i32 -> vector<8x128xf32>
    %97 = arith.addf %95, %96 : vector<8x128xf32>
    %98 = arith.addf %97, %22 : vector<8x128xf32>
    %99 = arith.truncf %98 : vector<8x128xf32> to vector<8x128xbf16>
    %c2_46 = arith.constant 2 : index
    %c0_47 = arith.constant 0 : index
    %c0_48 = arith.constant 0 : index
    %100 = vector.load %arg1[%c2_46, %c0_47, %c0_48] : memref<4x128x128xbf16, #tpu.memory_space<vmem>>, vector<1x128x128xbf16>
    %101 = vector.shape_cast %100 : vector<1x128x128xbf16> to vector<128x128xbf16>
    %cst_49 = arith.constant dense<0.000000e+00> : vector<8x128xf32>
    %102 = tpu.matmul %99, %101, %cst_49 {dimension_numbers = #tpu.dot_dimension_numbers<[1], [0], [0], [1], [0, 0, 1, 1], [], []>} : vector<8x128xbf16>, vector<128x128xbf16>, vector<8x128xf32> -> vector<8x128xf32>
    %103 = arith.mulf %102, %8 : vector<8x128xf32>
    %104 = math.tanh %103 : vector<8x128xf32>
    %105 = arith.mulf %104, %11 : vector<8x128xf32>
    %106 = arith.addf %105, %14 : vector<8x128xf32>
    %c96_i32_50 = arith.constant 96 : i32
    %107 = tpu.dynamic_rotate %106 by %c96_i32_50 dim 1 : vector<8x128xf32>, i32 -> vector<8x128xf32>
    %c64_i32_51 = arith.constant 64 : i32
    %108 = tpu.dynamic_rotate %106 by %c64_i32_51 dim 1 : vector<8x128xf32>, i32 -> vector<8x128xf32>
    %c32_i32_52 = arith.constant 32 : i32
    %109 = tpu.dynamic_rotate %106 by %c32_i32_52 dim 1 : vector<8x128xf32>, i32 -> vector<8x128xf32>
    %110 = arith.mulf %107, %72 : vector<8x128xf32>
    %111 = arith.mulf %106, %108 : vector<8x128xf32>
    %112 = arith.addf %110, %111 : vector<8x128xf32>
    %113 = math.tanh %112 : vector<8x128xf32>
    %114 = arith.mulf %109, %113 : vector<8x128xf32>
    %115 = arith.mulf %18, %114 : vector<8x128xf32>
    %c2_53 = arith.constant 2 : index
    %c0_54 = arith.constant 0 : index
    %c0_55 = arith.constant 0 : index
    %116 = vector.load %arg4[%c2_53, %c0_54, %c0_55] : memref<8x8x128xf32, #tpu.memory_space<vmem>>, vector<1x8x128xf32>
    %117 = vector.shape_cast %116 : vector<1x8x128xf32> to vector<8x128xf32>
    %118 = arith.truncf %95 : vector<8x128xf32> to vector<8x128xbf16>
    %c1_56 = arith.constant 1 : index
    %c0_57 = arith.constant 0 : index
    %c0_58 = arith.constant 0 : index
    %119 = vector.load %arg1[%c1_56, %c0_57, %c0_58] : memref<4x128x128xbf16, #tpu.memory_space<vmem>>, vector<1x128x128xbf16>
    %120 = vector.shape_cast %119 : vector<1x128x128xbf16> to vector<128x128xbf16>
    %cst_59 = arith.constant dense<0.000000e+00> : vector<8x128xf32>
    %121 = tpu.matmul %118, %120, %cst_59 {dimension_numbers = #tpu.dot_dimension_numbers<[1], [0], [0], [1], [0, 0, 1, 1], [], []>} : vector<8x128xbf16>, vector<128x128xbf16>, vector<8x128xf32> -> vector<8x128xf32>
    %122 = arith.addf %117, %121 : vector<8x128xf32>
    %123 = arith.mulf %122, %8 : vector<8x128xf32>
    %124 = math.tanh %123 : vector<8x128xf32>
    %125 = arith.mulf %124, %11 : vector<8x128xf32>
    %126 = arith.addf %125, %14 : vector<8x128xf32>
    %c96_i32_60 = arith.constant 96 : i32
    %127 = tpu.dynamic_rotate %126 by %c96_i32_60 dim 1 : vector<8x128xf32>, i32 -> vector<8x128xf32>
    %c64_i32_61 = arith.constant 64 : i32
    %128 = tpu.dynamic_rotate %126 by %c64_i32_61 dim 1 : vector<8x128xf32>, i32 -> vector<8x128xf32>
    %c32_i32_62 = arith.constant 32 : i32
    %129 = tpu.dynamic_rotate %126 by %c32_i32_62 dim 1 : vector<8x128xf32>, i32 -> vector<8x128xf32>
    %130 = arith.mulf %127, %92 : vector<8x128xf32>
    %131 = arith.mulf %126, %128 : vector<8x128xf32>
    %132 = arith.addf %130, %131 : vector<8x128xf32>
    %133 = math.tanh %132 : vector<8x128xf32>
    %134 = arith.mulf %129, %133 : vector<8x128xf32>
    %135 = arith.mulf %18, %134 : vector<8x128xf32>
    %c32_i32_63 = arith.constant 32 : i32
    %136 = tpu.dynamic_rotate %115 by %c32_i32_63 dim 1 : vector<8x128xf32>, i32 -> vector<8x128xf32>
    %137 = arith.addf %135, %136 : vector<8x128xf32>
    %138 = arith.addf %137, %22 : vector<8x128xf32>
    %139 = arith.truncf %138 : vector<8x128xf32> to vector<8x128xbf16>
    %c2_64 = arith.constant 2 : index
    %c0_65 = arith.constant 0 : index
    %c0_66 = arith.constant 0 : index
    %140 = vector.load %arg1[%c2_64, %c0_65, %c0_66] : memref<4x128x128xbf16, #tpu.memory_space<vmem>>, vector<1x128x128xbf16>
    %141 = vector.shape_cast %140 : vector<1x128x128xbf16> to vector<128x128xbf16>
    %cst_67 = arith.constant dense<0.000000e+00> : vector<8x128xf32>
    %142 = tpu.matmul %139, %141, %cst_67 {dimension_numbers = #tpu.dot_dimension_numbers<[1], [0], [0], [1], [0, 0, 1, 1], [], []>} : vector<8x128xbf16>, vector<128x128xbf16>, vector<8x128xf32> -> vector<8x128xf32>
    %143 = arith.mulf %142, %8 : vector<8x128xf32>
    %144 = math.tanh %143 : vector<8x128xf32>
    %145 = arith.mulf %144, %11 : vector<8x128xf32>
    %146 = arith.addf %145, %14 : vector<8x128xf32>
    %c96_i32_68 = arith.constant 96 : i32
    %147 = tpu.dynamic_rotate %146 by %c96_i32_68 dim 1 : vector<8x128xf32>, i32 -> vector<8x128xf32>
    %c64_i32_69 = arith.constant 64 : i32
    %148 = tpu.dynamic_rotate %146 by %c64_i32_69 dim 1 : vector<8x128xf32>, i32 -> vector<8x128xf32>
    %c32_i32_70 = arith.constant 32 : i32
    %149 = tpu.dynamic_rotate %146 by %c32_i32_70 dim 1 : vector<8x128xf32>, i32 -> vector<8x128xf32>
    %150 = arith.mulf %147, %112 : vector<8x128xf32>
    %151 = arith.mulf %146, %148 : vector<8x128xf32>
    %152 = arith.addf %150, %151 : vector<8x128xf32>
    %153 = math.tanh %152 : vector<8x128xf32>
    %154 = arith.mulf %149, %153 : vector<8x128xf32>
    %155 = arith.mulf %18, %154 : vector<8x128xf32>
    %c3 = arith.constant 3 : index
    %c0_71 = arith.constant 0 : index
    %c0_72 = arith.constant 0 : index
    %156 = vector.load %arg4[%c3, %c0_71, %c0_72] : memref<8x8x128xf32, #tpu.memory_space<vmem>>, vector<1x8x128xf32>
    %157 = vector.shape_cast %156 : vector<1x8x128xf32> to vector<8x128xf32>
    %158 = arith.truncf %135 : vector<8x128xf32> to vector<8x128xbf16>
    %c1_73 = arith.constant 1 : index
    %c0_74 = arith.constant 0 : index
    %c0_75 = arith.constant 0 : index
    %159 = vector.load %arg1[%c1_73, %c0_74, %c0_75] : memref<4x128x128xbf16, #tpu.memory_space<vmem>>, vector<1x128x128xbf16>
    %160 = vector.shape_cast %159 : vector<1x128x128xbf16> to vector<128x128xbf16>
    %cst_76 = arith.constant dense<0.000000e+00> : vector<8x128xf32>
    %161 = tpu.matmul %158, %160, %cst_76 {dimension_numbers = #tpu.dot_dimension_numbers<[1], [0], [0], [1], [0, 0, 1, 1], [], []>} : vector<8x128xbf16>, vector<128x128xbf16>, vector<8x128xf32> -> vector<8x128xf32>
    %162 = arith.addf %157, %161 : vector<8x128xf32>
    %163 = arith.mulf %162, %8 : vector<8x128xf32>
    %164 = math.tanh %163 : vector<8x128xf32>
    %165 = arith.mulf %164, %11 : vector<8x128xf32>
    %166 = arith.addf %165, %14 : vector<8x128xf32>
    %c96_i32_77 = arith.constant 96 : i32
    %167 = tpu.dynamic_rotate %166 by %c96_i32_77 dim 1 : vector<8x128xf32>, i32 -> vector<8x128xf32>
    %c64_i32_78 = arith.constant 64 : i32
    %168 = tpu.dynamic_rotate %166 by %c64_i32_78 dim 1 : vector<8x128xf32>, i32 -> vector<8x128xf32>
    %c32_i32_79 = arith.constant 32 : i32
    %169 = tpu.dynamic_rotate %166 by %c32_i32_79 dim 1 : vector<8x128xf32>, i32 -> vector<8x128xf32>
    %170 = arith.mulf %167, %132 : vector<8x128xf32>
    %171 = arith.mulf %166, %168 : vector<8x128xf32>
    %172 = arith.addf %170, %171 : vector<8x128xf32>
    %173 = math.tanh %172 : vector<8x128xf32>
    %174 = arith.mulf %169, %173 : vector<8x128xf32>
    %175 = arith.mulf %18, %174 : vector<8x128xf32>
    %c32_i32_80 = arith.constant 32 : i32
    %176 = tpu.dynamic_rotate %155 by %c32_i32_80 dim 1 : vector<8x128xf32>, i32 -> vector<8x128xf32>
    %177 = arith.addf %175, %176 : vector<8x128xf32>
    %178 = arith.addf %177, %22 : vector<8x128xf32>
    %179 = arith.truncf %178 : vector<8x128xf32> to vector<8x128xbf16>
    %c2_81 = arith.constant 2 : index
    %c0_82 = arith.constant 0 : index
    %c0_83 = arith.constant 0 : index
    %180 = vector.load %arg1[%c2_81, %c0_82, %c0_83] : memref<4x128x128xbf16, #tpu.memory_space<vmem>>, vector<1x128x128xbf16>
    %181 = vector.shape_cast %180 : vector<1x128x128xbf16> to vector<128x128xbf16>
    %cst_84 = arith.constant dense<0.000000e+00> : vector<8x128xf32>
    %182 = tpu.matmul %179, %181, %cst_84 {dimension_numbers = #tpu.dot_dimension_numbers<[1], [0], [0], [1], [0, 0, 1, 1], [], []>} : vector<8x128xbf16>, vector<128x128xbf16>, vector<8x128xf32> -> vector<8x128xf32>
    %183 = arith.mulf %182, %8 : vector<8x128xf32>
    %184 = math.tanh %183 : vector<8x128xf32>
    %185 = arith.mulf %184, %11 : vector<8x128xf32>
    %186 = arith.addf %185, %14 : vector<8x128xf32>
    %c96_i32_85 = arith.constant 96 : i32
    %187 = tpu.dynamic_rotate %186 by %c96_i32_85 dim 1 : vector<8x128xf32>, i32 -> vector<8x128xf32>
    %c64_i32_86 = arith.constant 64 : i32
    %188 = tpu.dynamic_rotate %186 by %c64_i32_86 dim 1 : vector<8x128xf32>, i32 -> vector<8x128xf32>
    %c32_i32_87 = arith.constant 32 : i32
    %189 = tpu.dynamic_rotate %186 by %c32_i32_87 dim 1 : vector<8x128xf32>, i32 -> vector<8x128xf32>
    %190 = arith.mulf %187, %152 : vector<8x128xf32>
    %191 = arith.mulf %186, %188 : vector<8x128xf32>
    %192 = arith.addf %190, %191 : vector<8x128xf32>
    %193 = math.tanh %192 : vector<8x128xf32>
    %194 = arith.mulf %189, %193 : vector<8x128xf32>
    %195 = arith.mulf %18, %194 : vector<8x128xf32>
    %c4 = arith.constant 4 : index
    %c0_88 = arith.constant 0 : index
    %c0_89 = arith.constant 0 : index
    %196 = vector.load %arg4[%c4, %c0_88, %c0_89] : memref<8x8x128xf32, #tpu.memory_space<vmem>>, vector<1x8x128xf32>
    %197 = vector.shape_cast %196 : vector<1x8x128xf32> to vector<8x128xf32>
    %198 = arith.truncf %175 : vector<8x128xf32> to vector<8x128xbf16>
    %c1_90 = arith.constant 1 : index
    %c0_91 = arith.constant 0 : index
    %c0_92 = arith.constant 0 : index
    %199 = vector.load %arg1[%c1_90, %c0_91, %c0_92] : memref<4x128x128xbf16, #tpu.memory_space<vmem>>, vector<1x128x128xbf16>
    %200 = vector.shape_cast %199 : vector<1x128x128xbf16> to vector<128x128xbf16>
    %cst_93 = arith.constant dense<0.000000e+00> : vector<8x128xf32>
    %201 = tpu.matmul %198, %200, %cst_93 {dimension_numbers = #tpu.dot_dimension_numbers<[1], [0], [0], [1], [0, 0, 1, 1], [], []>} : vector<8x128xbf16>, vector<128x128xbf16>, vector<8x128xf32> -> vector<8x128xf32>
    %202 = arith.addf %197, %201 : vector<8x128xf32>
    %203 = arith.mulf %202, %8 : vector<8x128xf32>
    %204 = math.tanh %203 : vector<8x128xf32>
    %205 = arith.mulf %204, %11 : vector<8x128xf32>
    %206 = arith.addf %205, %14 : vector<8x128xf32>
    %c96_i32_94 = arith.constant 96 : i32
    %207 = tpu.dynamic_rotate %206 by %c96_i32_94 dim 1 : vector<8x128xf32>, i32 -> vector<8x128xf32>
    %c64_i32_95 = arith.constant 64 : i32
    %208 = tpu.dynamic_rotate %206 by %c64_i32_95 dim 1 : vector<8x128xf32>, i32 -> vector<8x128xf32>
    %c32_i32_96 = arith.constant 32 : i32
    %209 = tpu.dynamic_rotate %206 by %c32_i32_96 dim 1 : vector<8x128xf32>, i32 -> vector<8x128xf32>
    %210 = arith.mulf %207, %172 : vector<8x128xf32>
    %211 = arith.mulf %206, %208 : vector<8x128xf32>
    %212 = arith.addf %210, %211 : vector<8x128xf32>
    %213 = math.tanh %212 : vector<8x128xf32>
    %214 = arith.mulf %209, %213 : vector<8x128xf32>
    %215 = arith.mulf %18, %214 : vector<8x128xf32>
    %c32_i32_97 = arith.constant 32 : i32
    %216 = tpu.dynamic_rotate %195 by %c32_i32_97 dim 1 : vector<8x128xf32>, i32 -> vector<8x128xf32>
    %217 = arith.addf %215, %216 : vector<8x128xf32>
    %218 = arith.addf %217, %22 : vector<8x128xf32>
    %219 = arith.truncf %218 : vector<8x128xf32> to vector<8x128xbf16>
    %c2_98 = arith.constant 2 : index
    %c0_99 = arith.constant 0 : index
    %c0_100 = arith.constant 0 : index
    %220 = vector.load %arg1[%c2_98, %c0_99, %c0_100] : memref<4x128x128xbf16, #tpu.memory_space<vmem>>, vector<1x128x128xbf16>
    %221 = vector.shape_cast %220 : vector<1x128x128xbf16> to vector<128x128xbf16>
    %cst_101 = arith.constant dense<0.000000e+00> : vector<8x128xf32>
    %222 = tpu.matmul %219, %221, %cst_101 {dimension_numbers = #tpu.dot_dimension_numbers<[1], [0], [0], [1], [0, 0, 1, 1], [], []>} : vector<8x128xbf16>, vector<128x128xbf16>, vector<8x128xf32> -> vector<8x128xf32>
    %223 = arith.mulf %222, %8 : vector<8x128xf32>
    %224 = math.tanh %223 : vector<8x128xf32>
    %225 = arith.mulf %224, %11 : vector<8x128xf32>
    %226 = arith.addf %225, %14 : vector<8x128xf32>
    %c96_i32_102 = arith.constant 96 : i32
    %227 = tpu.dynamic_rotate %226 by %c96_i32_102 dim 1 : vector<8x128xf32>, i32 -> vector<8x128xf32>
    %c64_i32_103 = arith.constant 64 : i32
    %228 = tpu.dynamic_rotate %226 by %c64_i32_103 dim 1 : vector<8x128xf32>, i32 -> vector<8x128xf32>
    %c32_i32_104 = arith.constant 32 : i32
    %229 = tpu.dynamic_rotate %226 by %c32_i32_104 dim 1 : vector<8x128xf32>, i32 -> vector<8x128xf32>
    %230 = arith.mulf %227, %192 : vector<8x128xf32>
    %231 = arith.mulf %226, %228 : vector<8x128xf32>
    %232 = arith.addf %230, %231 : vector<8x128xf32>
    %233 = math.tanh %232 : vector<8x128xf32>
    %234 = arith.mulf %229, %233 : vector<8x128xf32>
    %235 = arith.mulf %18, %234 : vector<8x128xf32>
    %c5 = arith.constant 5 : index
    %c0_105 = arith.constant 0 : index
    %c0_106 = arith.constant 0 : index
    %236 = vector.load %arg4[%c5, %c0_105, %c0_106] : memref<8x8x128xf32, #tpu.memory_space<vmem>>, vector<1x8x128xf32>
    %237 = vector.shape_cast %236 : vector<1x8x128xf32> to vector<8x128xf32>
    %238 = arith.truncf %215 : vector<8x128xf32> to vector<8x128xbf16>
    %c1_107 = arith.constant 1 : index
    %c0_108 = arith.constant 0 : index
    %c0_109 = arith.constant 0 : index
    %239 = vector.load %arg1[%c1_107, %c0_108, %c0_109] : memref<4x128x128xbf16, #tpu.memory_space<vmem>>, vector<1x128x128xbf16>
    %240 = vector.shape_cast %239 : vector<1x128x128xbf16> to vector<128x128xbf16>
    %cst_110 = arith.constant dense<0.000000e+00> : vector<8x128xf32>
    %241 = tpu.matmul %238, %240, %cst_110 {dimension_numbers = #tpu.dot_dimension_numbers<[1], [0], [0], [1], [0, 0, 1, 1], [], []>} : vector<8x128xbf16>, vector<128x128xbf16>, vector<8x128xf32> -> vector<8x128xf32>
    %242 = arith.addf %237, %241 : vector<8x128xf32>
    %243 = arith.mulf %242, %8 : vector<8x128xf32>
    %244 = math.tanh %243 : vector<8x128xf32>
    %245 = arith.mulf %244, %11 : vector<8x128xf32>
    %246 = arith.addf %245, %14 : vector<8x128xf32>
    %c96_i32_111 = arith.constant 96 : i32
    %247 = tpu.dynamic_rotate %246 by %c96_i32_111 dim 1 : vector<8x128xf32>, i32 -> vector<8x128xf32>
    %c64_i32_112 = arith.constant 64 : i32
    %248 = tpu.dynamic_rotate %246 by %c64_i32_112 dim 1 : vector<8x128xf32>, i32 -> vector<8x128xf32>
    %c32_i32_113 = arith.constant 32 : i32
    %249 = tpu.dynamic_rotate %246 by %c32_i32_113 dim 1 : vector<8x128xf32>, i32 -> vector<8x128xf32>
    %250 = arith.mulf %247, %212 : vector<8x128xf32>
    %251 = arith.mulf %246, %248 : vector<8x128xf32>
    %252 = arith.addf %250, %251 : vector<8x128xf32>
    %253 = math.tanh %252 : vector<8x128xf32>
    %254 = arith.mulf %249, %253 : vector<8x128xf32>
    %255 = arith.mulf %18, %254 : vector<8x128xf32>
    %c32_i32_114 = arith.constant 32 : i32
    %256 = tpu.dynamic_rotate %235 by %c32_i32_114 dim 1 : vector<8x128xf32>, i32 -> vector<8x128xf32>
    %257 = arith.addf %255, %256 : vector<8x128xf32>
    %258 = arith.addf %257, %22 : vector<8x128xf32>
    %259 = arith.truncf %258 : vector<8x128xf32> to vector<8x128xbf16>
    %c2_115 = arith.constant 2 : index
    %c0_116 = arith.constant 0 : index
    %c0_117 = arith.constant 0 : index
    %260 = vector.load %arg1[%c2_115, %c0_116, %c0_117] : memref<4x128x128xbf16, #tpu.memory_space<vmem>>, vector<1x128x128xbf16>
    %261 = vector.shape_cast %260 : vector<1x128x128xbf16> to vector<128x128xbf16>
    %cst_118 = arith.constant dense<0.000000e+00> : vector<8x128xf32>
    %262 = tpu.matmul %259, %261, %cst_118 {dimension_numbers = #tpu.dot_dimension_numbers<[1], [0], [0], [1], [0, 0, 1, 1], [], []>} : vector<8x128xbf16>, vector<128x128xbf16>, vector<8x128xf32> -> vector<8x128xf32>
    %263 = arith.mulf %262, %8 : vector<8x128xf32>
    %264 = math.tanh %263 : vector<8x128xf32>
    %265 = arith.mulf %264, %11 : vector<8x128xf32>
    %266 = arith.addf %265, %14 : vector<8x128xf32>
    %c96_i32_119 = arith.constant 96 : i32
    %267 = tpu.dynamic_rotate %266 by %c96_i32_119 dim 1 : vector<8x128xf32>, i32 -> vector<8x128xf32>
    %c64_i32_120 = arith.constant 64 : i32
    %268 = tpu.dynamic_rotate %266 by %c64_i32_120 dim 1 : vector<8x128xf32>, i32 -> vector<8x128xf32>
    %c32_i32_121 = arith.constant 32 : i32
    %269 = tpu.dynamic_rotate %266 by %c32_i32_121 dim 1 : vector<8x128xf32>, i32 -> vector<8x128xf32>
    %270 = arith.mulf %267, %232 : vector<8x128xf32>
    %271 = arith.mulf %266, %268 : vector<8x128xf32>
    %272 = arith.addf %270, %271 : vector<8x128xf32>
    %273 = math.tanh %272 : vector<8x128xf32>
    %274 = arith.mulf %269, %273 : vector<8x128xf32>
    %275 = arith.mulf %18, %274 : vector<8x128xf32>
    %c6 = arith.constant 6 : index
    %c0_122 = arith.constant 0 : index
    %c0_123 = arith.constant 0 : index
    %276 = vector.load %arg4[%c6, %c0_122, %c0_123] : memref<8x8x128xf32, #tpu.memory_space<vmem>>, vector<1x8x128xf32>
    %277 = vector.shape_cast %276 : vector<1x8x128xf32> to vector<8x128xf32>
    %278 = arith.truncf %255 : vector<8x128xf32> to vector<8x128xbf16>
    %c1_124 = arith.constant 1 : index
    %c0_125 = arith.constant 0 : index
    %c0_126 = arith.constant 0 : index
    %279 = vector.load %arg1[%c1_124, %c0_125, %c0_126] : memref<4x128x128xbf16, #tpu.memory_space<vmem>>, vector<1x128x128xbf16>
    %280 = vector.shape_cast %279 : vector<1x128x128xbf16> to vector<128x128xbf16>
    %cst_127 = arith.constant dense<0.000000e+00> : vector<8x128xf32>
    %281 = tpu.matmul %278, %280, %cst_127 {dimension_numbers = #tpu.dot_dimension_numbers<[1], [0], [0], [1], [0, 0, 1, 1], [], []>} : vector<8x128xbf16>, vector<128x128xbf16>, vector<8x128xf32> -> vector<8x128xf32>
    %282 = arith.addf %277, %281 : vector<8x128xf32>
    %283 = arith.mulf %282, %8 : vector<8x128xf32>
    %284 = math.tanh %283 : vector<8x128xf32>
    %285 = arith.mulf %284, %11 : vector<8x128xf32>
    %286 = arith.addf %285, %14 : vector<8x128xf32>
    %c96_i32_128 = arith.constant 96 : i32
    %287 = tpu.dynamic_rotate %286 by %c96_i32_128 dim 1 : vector<8x128xf32>, i32 -> vector<8x128xf32>
    %c64_i32_129 = arith.constant 64 : i32
    %288 = tpu.dynamic_rotate %286 by %c64_i32_129 dim 1 : vector<8x128xf32>, i32 -> vector<8x128xf32>
    %c32_i32_130 = arith.constant 32 : i32
    %289 = tpu.dynamic_rotate %286 by %c32_i32_130 dim 1 : vector<8x128xf32>, i32 -> vector<8x128xf32>
    %290 = arith.mulf %287, %252 : vector<8x128xf32>
    %291 = arith.mulf %286, %288 : vector<8x128xf32>
    %292 = arith.addf %290, %291 : vector<8x128xf32>
    %293 = math.tanh %292 : vector<8x128xf32>
    %294 = arith.mulf %289, %293 : vector<8x128xf32>
    %295 = arith.mulf %18, %294 : vector<8x128xf32>
    %c32_i32_131 = arith.constant 32 : i32
    %296 = tpu.dynamic_rotate %275 by %c32_i32_131 dim 1 : vector<8x128xf32>, i32 -> vector<8x128xf32>
    %297 = arith.addf %295, %296 : vector<8x128xf32>
    %298 = arith.addf %297, %22 : vector<8x128xf32>
    %299 = arith.truncf %298 : vector<8x128xf32> to vector<8x128xbf16>
    %c2_132 = arith.constant 2 : index
    %c0_133 = arith.constant 0 : index
    %c0_134 = arith.constant 0 : index
    %300 = vector.load %arg1[%c2_132, %c0_133, %c0_134] : memref<4x128x128xbf16, #tpu.memory_space<vmem>>, vector<1x128x128xbf16>
    %301 = vector.shape_cast %300 : vector<1x128x128xbf16> to vector<128x128xbf16>
    %cst_135 = arith.constant dense<0.000000e+00> : vector<8x128xf32>
    %302 = tpu.matmul %299, %301, %cst_135 {dimension_numbers = #tpu.dot_dimension_numbers<[1], [0], [0], [1], [0, 0, 1, 1], [], []>} : vector<8x128xbf16>, vector<128x128xbf16>, vector<8x128xf32> -> vector<8x128xf32>
    %303 = arith.mulf %302, %8 : vector<8x128xf32>
    %304 = math.tanh %303 : vector<8x128xf32>
    %305 = arith.mulf %304, %11 : vector<8x128xf32>
    %306 = arith.addf %305, %14 : vector<8x128xf32>
    %c96_i32_136 = arith.constant 96 : i32
    %307 = tpu.dynamic_rotate %306 by %c96_i32_136 dim 1 : vector<8x128xf32>, i32 -> vector<8x128xf32>
    %c64_i32_137 = arith.constant 64 : i32
    %308 = tpu.dynamic_rotate %306 by %c64_i32_137 dim 1 : vector<8x128xf32>, i32 -> vector<8x128xf32>
    %c32_i32_138 = arith.constant 32 : i32
    %309 = tpu.dynamic_rotate %306 by %c32_i32_138 dim 1 : vector<8x128xf32>, i32 -> vector<8x128xf32>
    %310 = arith.mulf %307, %272 : vector<8x128xf32>
    %311 = arith.mulf %306, %308 : vector<8x128xf32>
    %312 = arith.addf %310, %311 : vector<8x128xf32>
    %313 = math.tanh %312 : vector<8x128xf32>
    %314 = arith.mulf %309, %313 : vector<8x128xf32>
    %315 = arith.mulf %18, %314 : vector<8x128xf32>
    %c7 = arith.constant 7 : index
    %c0_139 = arith.constant 0 : index
    %c0_140 = arith.constant 0 : index
    %316 = vector.load %arg4[%c7, %c0_139, %c0_140] : memref<8x8x128xf32, #tpu.memory_space<vmem>>, vector<1x8x128xf32>
    %317 = vector.shape_cast %316 : vector<1x8x128xf32> to vector<8x128xf32>
    %318 = arith.truncf %295 : vector<8x128xf32> to vector<8x128xbf16>
    %c1_141 = arith.constant 1 : index
    %c0_142 = arith.constant 0 : index
    %c0_143 = arith.constant 0 : index
    %319 = vector.load %arg1[%c1_141, %c0_142, %c0_143] : memref<4x128x128xbf16, #tpu.memory_space<vmem>>, vector<1x128x128xbf16>
    %320 = vector.shape_cast %319 : vector<1x128x128xbf16> to vector<128x128xbf16>
    %cst_144 = arith.constant dense<0.000000e+00> : vector<8x128xf32>
    %321 = tpu.matmul %318, %320, %cst_144 {dimension_numbers = #tpu.dot_dimension_numbers<[1], [0], [0], [1], [0, 0, 1, 1], [], []>} : vector<8x128xbf16>, vector<128x128xbf16>, vector<8x128xf32> -> vector<8x128xf32>
    %322 = arith.addf %317, %321 : vector<8x128xf32>
    %323 = arith.mulf %322, %8 : vector<8x128xf32>
    %324 = math.tanh %323 : vector<8x128xf32>
    %325 = arith.mulf %324, %11 : vector<8x128xf32>
    %326 = arith.addf %325, %14 : vector<8x128xf32>
    %c96_i32_145 = arith.constant 96 : i32
    %327 = tpu.dynamic_rotate %326 by %c96_i32_145 dim 1 : vector<8x128xf32>, i32 -> vector<8x128xf32>
    %c64_i32_146 = arith.constant 64 : i32
    %328 = tpu.dynamic_rotate %326 by %c64_i32_146 dim 1 : vector<8x128xf32>, i32 -> vector<8x128xf32>
    %c32_i32_147 = arith.constant 32 : i32
    %329 = tpu.dynamic_rotate %326 by %c32_i32_147 dim 1 : vector<8x128xf32>, i32 -> vector<8x128xf32>
    %330 = arith.mulf %327, %292 : vector<8x128xf32>
    %331 = arith.mulf %326, %328 : vector<8x128xf32>
    %332 = arith.addf %330, %331 : vector<8x128xf32>
    %333 = math.tanh %332 : vector<8x128xf32>
    %334 = arith.mulf %329, %333 : vector<8x128xf32>
    %335 = arith.mulf %18, %334 : vector<8x128xf32>
    %c32_i32_148 = arith.constant 32 : i32
    %336 = tpu.dynamic_rotate %315 by %c32_i32_148 dim 1 : vector<8x128xf32>, i32 -> vector<8x128xf32>
    %337 = arith.addf %335, %336 : vector<8x128xf32>
    %338 = arith.addf %337, %22 : vector<8x128xf32>
    %339 = arith.truncf %338 : vector<8x128xf32> to vector<8x128xbf16>
    %c2_149 = arith.constant 2 : index
    %c0_150 = arith.constant 0 : index
    %c0_151 = arith.constant 0 : index
    %340 = vector.load %arg1[%c2_149, %c0_150, %c0_151] : memref<4x128x128xbf16, #tpu.memory_space<vmem>>, vector<1x128x128xbf16>
    %341 = vector.shape_cast %340 : vector<1x128x128xbf16> to vector<128x128xbf16>
    %cst_152 = arith.constant dense<0.000000e+00> : vector<8x128xf32>
    %342 = tpu.matmul %339, %341, %cst_152 {dimension_numbers = #tpu.dot_dimension_numbers<[1], [0], [0], [1], [0, 0, 1, 1], [], []>} : vector<8x128xbf16>, vector<128x128xbf16>, vector<8x128xf32> -> vector<8x128xf32>
    %343 = arith.mulf %342, %8 : vector<8x128xf32>
    %344 = math.tanh %343 : vector<8x128xf32>
    %345 = arith.mulf %344, %11 : vector<8x128xf32>
    %346 = arith.addf %345, %14 : vector<8x128xf32>
    %c96_i32_153 = arith.constant 96 : i32
    %347 = tpu.dynamic_rotate %346 by %c96_i32_153 dim 1 : vector<8x128xf32>, i32 -> vector<8x128xf32>
    %c64_i32_154 = arith.constant 64 : i32
    %348 = tpu.dynamic_rotate %346 by %c64_i32_154 dim 1 : vector<8x128xf32>, i32 -> vector<8x128xf32>
    %c32_i32_155 = arith.constant 32 : i32
    %349 = tpu.dynamic_rotate %346 by %c32_i32_155 dim 1 : vector<8x128xf32>, i32 -> vector<8x128xf32>
    %350 = arith.mulf %347, %312 : vector<8x128xf32>
    %351 = arith.mulf %346, %348 : vector<8x128xf32>
    %352 = arith.addf %350, %351 : vector<8x128xf32>
    %353 = math.tanh %352 : vector<8x128xf32>
    %354 = arith.mulf %349, %353 : vector<8x128xf32>
    %355 = arith.mulf %18, %354 : vector<8x128xf32>
    %356 = arith.truncf %355 : vector<8x128xf32> to vector<8x128xbf16>
    %c3_156 = arith.constant 3 : index
    %c0_157 = arith.constant 0 : index
    %c0_158 = arith.constant 0 : index
    %357 = vector.load %arg1[%c3_156, %c0_157, %c0_158] : memref<4x128x128xbf16, #tpu.memory_space<vmem>>, vector<1x128x128xbf16>
    %358 = vector.shape_cast %357 : vector<1x128x128xbf16> to vector<128x128xbf16>
    %cst_159 = arith.constant dense<0.000000e+00> : vector<8x128xf32>
    %359 = tpu.matmul %356, %358, %cst_159 {dimension_numbers = #tpu.dot_dimension_numbers<[1], [0], [0], [1], [0, 0, 1, 1], [], []>} : vector<8x128xbf16>, vector<128x128xbf16>, vector<8x128xf32> -> vector<8x128xf32>
    %c1_160 = arith.constant 1 : index
    %c0_161 = arith.constant 0 : index
    %c0_162 = arith.constant 0 : index
    %360 = vector.load %arg2[%c1_160, %c0_161, %c0_162] : memref<2x1x128xf32, #tpu.memory_space<vmem>>, vector<1x1x128xf32>
    %361 = vector.shape_cast %360 : vector<1x1x128xf32> to vector<1x128xf32>
    %362 = vector.broadcast %361 : vector<1x128xf32> to vector<8x128xf32>
    %363 = arith.addf %359, %362 : vector<8x128xf32>
    %c0_163 = arith.constant 0 : index
    %c0_164 = arith.constant 0 : index
    %364 = vector.load %arg3[%c0_163, %c0_164] : memref<8x128xf32, #tpu.memory_space<vmem>>, vector<8x128xf32>
    tpu.vector_store %arg3[%c0_163, %c0_164], %363 {strides = array<i32>} : memref<8x128xf32, #tpu.memory_space<vmem>>, vector<8x128xf32>,
    return
  }
}

</mosaic_0001>

<bundles_post_ra>
// kernel: action_lstm_forward.1
= control target key start
LH: loop header
LB: loop body
LE: loop exit
PB: predicated region body
PF: predicated region fallthrough
CT: control target
= control target key end

     0   :  { %8 = vsyncpa [#allocation4], 0  ;;  %s2126_s12 = smov [#allocation3]   ;;  %s2790_s0 = inlined_call_operand.vmem [shape: f32[8,8,128], index: 0, kind: input, shape index: {}]   ;;  %s2791_s1 = inlined_call_operand.hbm [shape: bf16[4,128,128], index: 1, kind: input, shape index: {}]   ;;  %s2792_s2 = inlined_call_operand.vmem [shape: f32[2,1,128], index: 2, kind: input, shape index: {}]   ;;  %s2793_s3 = inlined_call_operand.vmem [shape: f32[8,128], index: 3, kind: output, shape index: {}]  }
   0x1   :  { %s16_s13 = sshll.u32 %s2126_s12, 4  ;;  %s2102_s16 = scalar_lea.hbm %s2791_s1, 4096  ;;  %s17_s13 = int_to_ptr.vmem [resolvable:$true] %s16_s13 }
   0x2   :  { %p2103_p0 = scmp.ne.s32.totalorder %s2791_s1, %s2102_s16  ;;  %p2106_p1 = scmp.lt.u32.totalorder %s2102_s16, %s2791_s1 }
   0x4   :  { %p2108_p2 = pnand %p2106_p1, %p2103_p0 }
   0x6   :  { %2111 = shalt.err (!%p2108_p2)
}
   0x7   :  { %s2112_s21 = scalar_lea.vmem %s17_s13, 4096  ;;  %p2117_p4 = scmp.lt.s32.totalorder %s17_s13, %s17_s13 }
   0x8   :  { %p2113_p3 = scmp.ne.s32.totalorder %s17_s13, %s2112_s21  ;;  %p2118_p5 = scmp.lt.s32.totalorder %s2112_s21, %s2112_s21 }
   0xa   :  { %p2119_p6 = por %p2118_p5, %p2117_p4 }
   0xc   :  { %p2120_p7 = pnand %p2119_p6, %p2113_p3 }
   0xe   :  { %2123 = shalt.err (!%p2120_p7)
}
   0xf   :  { %s2127_s22 = smov 64   ;;  %s2128_s23 = smov 4  }
  0x10   :  { %22 = dma.hbm_to_vmem [thread:$0]  %s2791_s1, 4096, %s17_s13, [#allocation4], %s2127_s22, %s2127_s22, %s2128_s23  }
  0x11   :  { %2124 = dma.done.wait [#allocation4], 4096  }
  0x12   :  { %2125 = vsyncadd [#allocation4], 4294963200  ;;  %v2129_v0 = vmov 0.0   ;;  %vm2130_vm0 = vmmov 0   ;;  %v1989_v1 = vld [vmem:[#allocation3] sm:$0xff]   ;;  %v1991_v3 = vld [vmem:[#allocation3 + $0x8] sm:$0xff]   ;;  %v29_v25 = vlaneseq }
  0x13   :  { %1640 = vmatprep.subr.bf16.mxu1 %v2129_v0  ;;  %1656 = vmatprep.mubr.msk.bf16.mxu1 %vm2130_vm0, %v2129_v0  ;;  %v2172_v2 = vld [vmem:[#allocation3 + $0x40] sm:$0xff]   ;;  %v2175_v4 = vld [vmem:[#allocation3 + $0x48] sm:$0xff]   ;;  %v1993_v5 = vld [vmem:[#allocation3 + $0x10] sm:$0xff]   ;;  %v2131_v23 = vmov 0   ;;  %v2132_v36 = vmov 0.5   ;;  %s2133_s16 = smov 32  }
  0x14   :  { %1616 = vmatprep.subr.bf16.mxu0 %v1989_v1  ;;  %1641 = vmatpush3.bf16.msra.mxu1 %v2172_v2  ;;  %v2179_v6 = vld [vmem:[#allocation3 + $0x50] sm:$0xff]   ;;  %v1995_v7 = vld [vmem:[#allocation3 + $0x18] sm:$0xff]   ;;  %v1997_v9 = vld [vmem:[#allocation3 + $0x20] sm:$0xff]   ;;  %v2239_v26 = vand.u32 127, %v29_v25  ;;  %s2134_s17 = smov 96  }
  0x15   :  { %1617 = vmatpush3.bf16.msra.mxu0 %v1989_v1  ;;  %1642 = vmatprep.subr.bf16.mxu1 %v2129_v0  ;;  %v2183_v8 = vld [vmem:[#allocation3 + $0x58] sm:$0xff]   ;;  %v2187_v10 = vld [vmem:[#allocation3 + $0x60] sm:$0xff]   ;;  %v1999_v11 = vld [vmem:[#allocation3 + $0x28] sm:$0xff]  }
  0x16   :  { %1618 = vmatprep.subr.bf16.mxu0 %v1991_v3  ;;  %v42_v12 = vld [vmem:[%s2790_s0] sm:$0xff]  ;;  %v43_v13 = vld [vmem:[%s2790_s0 + $0x8] sm:$0xff]  ;;  %v2001_v16 = vld [vmem:[#allocation3 + $0x30] sm:$0xff]   ;;  %vm31_vm1 = vcmp.ge.s32.totalorder %v2239_v26, 64  ;;  %vm32_vm2 = vcmp.lt.s32.totalorder %v2239_v26, 96  ;;  %vm36_vm4 = vcmp.lt.s32.totalorder %v2239_v26, 32 }
  0x17   :  { %v2196_v14 = vld [vmem:[#allocation3 + $0x68] sm:$0xff]   ;;  %v50_v15 = vpack.c.bf16 %v43_v13, %v42_v12  ;;  %v2200_v17 = vld [vmem:[#allocation3 + $0x70] sm:$0xff]   ;;  %v2003_v18 = vld [vmem:[#allocation3 + $0x38] sm:$0xff]   ;;  %vm39_vm5 = vcmp.eq.s32.totalorder %v2239_v26, 64 }
  0x18   :  { %1643 = vmatpush3.bf16.msra.mxu1 %v2175_v4  ;;  %v2204_v19 = vld [vmem:[#allocation3 + $0x78] sm:$0xff]   ;;  %v44_v20 = vld [vmem:[%s2790_s0 + $0x10] sm:$0xff]  ;;  %v2235_v24 = vld [vmem:[#allocation3 + $0x80] sm:$0xff]   ;;  %v2327_v12 = vsel %vm39_vm5, 1.0, %v2129_v0 }
  0x19   :  { %1619 = vmatpush3.bf16.msra.mxu0 %v1991_v3  ;;  %1644 = vmatprep.subr.bf16.mxu1 %v2129_v0  ;;  %v45_v21 = vld [vmem:[%s2790_s0 + $0x18] sm:$0xff]  ;;  %v2246_v27 = vld [vmem:[%s2792_s2] ss:$0 sm:$0xff]  ;;  %vm2250_vm3 = vmand %vm31_vm1, %vm32_vm2 }
  0x1a   :  { %1620 = vmatprep.subr.bf16.mxu0 %v1993_v5  ;;  %1632 = vmatprep.mubr.bf16.mxu0 %v50_v15  ;;  %v51_v22 = vpack.c.bf16 %v45_v21, %v44_v20  ;;  %v2259_v37 = vsel %vm2250_vm3, 1.0, %v2132_v36  ;;  %v2264_v42 = vld [vmem:[#allocation3 + $0x88] sm:$0xff]   ;;  %v2268_v43 = vld [vmem:[#allocation3 + $0x90] sm:$0xff]   ;;  %v2274_v45 = vsel %vm2250_vm3, 0.0, %v2132_v36  ;;  %v2276_v46 = vld [vmem:[#allocation3 + $0x98] sm:$0xff]  }
  0x1b   :  { %v46_v47 = vld [vmem:[%s2790_s0 + $0x20] sm:$0xff]  ;;  %v47_v49 = vld [vmem:[%s2790_s0 + $0x28] sm:$0xff]  ;;  %v48_v50 = vld [vmem:[%s2790_s0 + $0x30] sm:$0xff] }
  0x1c   :  { %1645 = vmatpush3.bf16.msra.mxu1 %v2179_v6  ;;  %v49_v51 = vld [vmem:[%s2790_s0 + $0x38] sm:$0xff]  ;;  %v2292_v52 = vld [vmem:[#allocation3 + $0xa0] sm:$0xff]   ;;  %v52_v53 = vpack.c.bf16 %v47_v49, %v46_v47  ;;  %v2299_v56 = vld [vmem:[#allocation3 + $0xa8] sm:$0xff]  }
  0x1d   :  { %1621 = vmatpush3.bf16.msra.mxu0 %v1993_v5  ;;  %1646 = vmatprep.subr.bf16.mxu1 %v2129_v0  ;;  %v53_v55 = vpack.c.bf16 %v49_v51, %v48_v50  ;;  %v2308_v57 = vld [vmem:[#allocation3 + $0xb0] sm:$0xff]   ;;  %v2313_v58 = vld [vmem:[#allocation3 + $0xb8] sm:$0xff]   ;;  %v2322_v5 = vsel %vm36_vm4, 1.0, %v2129_v0 }
  0x1e   :  { %1622 = vmatprep.subr.bf16.mxu0 %v1995_v7 }
  0x20   :  { %1647 = vmatpush3.bf16.msra.mxu1 %v2183_v8 }
  0x21   :  { %1623 = vmatpush3.bf16.msra.mxu0 %v1995_v7  ;;  %1648 = vmatprep.subr.bf16.mxu1 %v2129_v0 }
  0x22   :  { %1624 = vmatprep.subr.bf16.mxu0 %v1997_v9 }
  0x24   :  { %1649 = vmatpush3.bf16.msra.mxu1 %v2187_v10 }
  0x25   :  { %1625 = vmatpush3.bf16.msra.mxu0 %v1997_v9  ;;  %1650 = vmatprep.subr.bf16.mxu1 %v2129_v0 }
  0x26   :  { %1626 = vmatprep.subr.bf16.mxu0 %v1999_v11 }
  0x28   :  { %1651 = vmatpush3.bf16.msra.mxu1 %v2196_v14 }
  0x29   :  { %1627 = vmatpush3.bf16.msra.mxu0 %v1999_v11  ;;  %1652 = vmatprep.subr.bf16.mxu1 %v2129_v0 }
  0x2a   :  { %1628 = vmatprep.subr.bf16.mxu0 %v2001_v16 }
  0x2c   :  { %1653 = vmatpush3.bf16.msra.mxu1 %v2200_v17 }
  0x2d   :  { %1629 = vmatpush3.bf16.msra.mxu0 %v2001_v16  ;;  %1654 = vmatprep.subr.bf16.mxu1 %v2129_v0 }
  0x2e   :  { %1630 = vmatprep.subr.bf16.mxu0 %v2003_v18 }
  0x30   :  { %1655 = vmatpush3.bf16.msra.mxu1 %v2204_v19 }
  0x31   :  { %1631 = vmatpush3.bf16.msra.mxu0 %v2003_v18  ;;  %1680 = vmatprep.subr.bf16.mxu1 %v2129_v0 }
  0x32   :  { %1660 = vmatprep.subr.bf16.mxu0 %v2129_v0 }
  0x33   :  { %1657 = vmatmul.mubr.bf16.vlgmr.msra.gmra.mrb[0].mxu1 %v2131_v23 }
  0x34   :  { %1633 = vmatmul.mubr.bf16.vlgmr.msra.gmra.mrb[0].mxu0 %v51_v22  ;;  %1681 = vmatpush3.bf16.msra.mxu1 %v2172_v2 }
  0x35   :  { %1696 = vmatprep.mubr.msk.bf16.mxu1 %vm2130_vm0, %v2129_v0  ;;  %1682 = vmatprep.subr.bf16.mxu1 %v2129_v0 }
  0x36   :  { %1661 = vmatpush3.bf16.msra.mxu0 %v2235_v24  ;;  %1636 = vmatprep.mubr.bf16.mxu0 %v52_v53 }
  0x37   :  { %1662 = vmatprep.subr.bf16.mxu0 %v2129_v0 }
  0x38   :  { %1683 = vmatpush3.bf16.msra.mxu1 %v2175_v4 }
  0x39   :  { %1684 = vmatprep.subr.bf16.mxu1 %v2129_v0 }
  0x3a   :  { %1663 = vmatpush3.bf16.msra.mxu0 %v2264_v42 }
  0x3b   :  { %1664 = vmatprep.subr.bf16.mxu0 %v2129_v0 }
  0x3c   :  { %1685 = vmatpush3.bf16.msra.mxu1 %v2179_v6  ;;  %1637 = vmatmul.mubr.bf16.gmra.mrb[4].mxu0 %v53_v55 }
  0x3d   :  { %1686 = vmatprep.subr.bf16.mxu1 %v2129_v0  ;;  %1676 = vmatprep.mubr.msk.bf16.mxu0 %vm2130_vm0, %v2129_v0 }
  0x3e   :  { %1665 = vmatpush3.bf16.msra.mxu0 %v2268_v43 }
  0x3f   :  { %1666 = vmatprep.subr.bf16.mxu0 %v2129_v0 }
  0x40   :  { %1687 = vmatpush3.bf16.msra.mxu1 %v2183_v8 }
  0x41   :  { %1688 = vmatprep.subr.bf16.mxu1 %v2129_v0 }
  0x42   :  { %1667 = vmatpush3.bf16.msra.mxu0 %v2276_v46 }
  0x43   :  { %1668 = vmatprep.subr.bf16.mxu0 %v2129_v0 }
  0x44   :  { %1689 = vmatpush3.bf16.msra.mxu1 %v2187_v10 }
  0x45   :  { %1690 = vmatprep.subr.bf16.mxu1 %v2129_v0 }
  0x46   :  { %1669 = vmatpush3.bf16.msra.mxu0 %v2292_v52 }
  0x47   :  { %1670 = vmatprep.subr.bf16.mxu0 %v2129_v0 }
  0x48   :  { %1691 = vmatpush3.bf16.msra.mxu1 %v2196_v14 }
  0x49   :  { %1692 = vmatprep.subr.bf16.mxu1 %v2129_v0 }
  0x4a   :  { %1671 = vmatpush3.bf16.msra.mxu0 %v2299_v56 }
  0x4b   :  { %1672 = vmatprep.subr.bf16.mxu0 %v2129_v0 }
  0x4c   :  { %1693 = vmatpush3.bf16.msra.mxu1 %v2200_v17 }
  0x4d   :  { %1694 = vmatprep.subr.bf16.mxu1 %v2129_v0 }
  0x4e   :  { %1673 = vmatpush3.bf16.msra.mxu0 %v2308_v57 }
  0x4f   :  { %1674 = vmatprep.subr.bf16.mxu0 %v2129_v0 }
  0x50   :  { %1695 = vmatpush3.bf16.msra.mxu1 %v2204_v19 }
  0x51   :  { %1720 = vmatprep.subr.bf16.mxu1 %v2129_v0 }
  0x52   :  { %1675 = vmatpush3.bf16.msra.mxu0 %v2313_v58 }
  0x53   :  { %1700 = vmatprep.subr.bf16.mxu0 %v2129_v0 }
 0x106   :  { %v298_v29 = vpop.f32.mrb[0].mxu1 }
 0x107   :  { %v2248_v28 = vpop.f32.mrb[0].mxu0  ;;  %v1658_v32 = vpop.f32.mrb[1].mxu1 }
 0x108   :  { %v159_v31 = vpop.f32.mrb[1].mxu0  ;;  %v301_v35 = vpop.f32.mrb[2].mxu1 }
 0x109   :  { %v160_v33 = vadd.f32 %v2246_v27, %v159_v31  ;;  %v2255_v34 = vpop.f32.mrb[2].mxu0  ;;  %v1659_v39 = vpop.f32.mrb[3].mxu1 }
 0x10a   :  { %v2261_v38 = vpop.f32.mrb[3].mxu0 }
 0x10b   :  { %v304_v40 = vadd.f32 %v298_v29, %v160_v33  ;;  %v163_v25 = vadd.f32 %v2246_v27, %v2261_v38 }
 0x10d   :  { %v305_v41 = vmul.f32 %v304_v40, %v2259_v37 }
 0x10f   :  { %2021 = vtanh.f32 %v305_v41  ;;  %v2366_v20 = vpop.f32.mrb[4].mxu0 }
 0x110   :  { %v2368_v21 = vpop.f32.mrb[5].mxu0 }
 0x111   :  { %v2370_v22 = vpop.f32.mrb[6].mxu0 }
 0x112   :  { %v2372_v23 = vpop.f32.mrb[7].mxu0 }
 0x119   :  { %v2022_v44 = vpop.eup %2021 }
 0x11a   :  { %v307_v48 = vmul.f32 %v2022_v44, %v2259_v37 }
 0x11c   :  { %v308_v54 = vadd.f32 %v307_v48, %v2274_v45 }
 0x11e   :  { %313 = vrot.lane.b32.xlu1 %v308_v54, %s2133_s16  ;;  %309 = vrot.lane.b32.xlu0 %v308_v54, %s2134_s17 }
 0x122   :  { %311 = vrot.lane.b32.xlu0 %v308_v54, %s2127_s22  ;;  %321 = vrot.lane.b32.xlu1 %v2129_v0, %s2133_s16 }
 0x190   :  { %v310_v59 = vpop.permute.xlu0 %309  ;;  %v314_v1 = vpop.permute.xlu1 %313 }
 0x191   :  { %v315_v61 = vmul.f32 0.0, %v310_v59 }
 0x194   :  { %v312_v60 = vpop.permute.xlu0 %311  ;;  %v322_v9 = vpop.permute.xlu1 %321 }
 0x195   :  { %v316_v62 = vmul.f32 %v312_v60, %v308_v54 }
 0x197   :  { %v2317_v63 = vadd.f32 %v316_v62, %v315_v61 }
 0x199   :  { %2023 = vtanh.f32 %v2317_v63 }
 0x1a3   :  { %v2024_v3 = vpop.eup %2023 }
 0x1a4   :  { %v319_v7 = vmul.f32 %v2024_v3, %v314_v1 }
 0x1a6   :  { %v320_v11 = vmul.f32 %v2322_v5, %v319_v7 }
 0x1a8   :  { %v323_v13 = vadd.f32 %v322_v9, %v320_v11  ;;  %v449_v15 = vpack.c.bf16 %v320_v11, %v320_v11 }
 0x1aa   :  { %v324_v16 = vadd.f32 %v2327_v12, %v323_v13  ;;  %1697 = vmatmul.mubr.bf16.vlgmr.msra.gmra.mrb[4].mxu1 %v449_v15 }
 0x1ab   :  { %1721 = vmatpush3.bf16.msra.mxu1 %v2172_v2  ;;  %1736 = vmatprep.mubr.msk.bf16.mxu1 %vm2130_vm0, %v2129_v0 }
 0x1ac   :  { %v325_v18 = vpack.c.bf16 %v324_v16, %v324_v16  ;;  %1722 = vmatprep.subr.bf16.mxu1 %v2129_v0 }
 0x1ae   :  { %1677 = vmatmul.mubr.bf16.vlgmr.msra.gmra.mrb[8].mxu0 %v325_v18 }
 0x1af   :  { %1723 = vmatpush3.bf16.msra.mxu1 %v2175_v4  ;;  %1701 = vmatpush3.bf16.msra.mxu0 %v2235_v24 }
 0x1b0   :  { %1724 = vmatprep.subr.bf16.mxu1 %v2129_v0  ;;  %1702 = vmatprep.subr.bf16.mxu0 %v2129_v0 }
 0x1b1   :  { %1716 = vmatprep.mubr.msk.bf16.mxu0 %vm2130_vm0, %v2129_v0 }
 0x1b3   :  { %1725 = vmatpush3.bf16.msra.mxu1 %v2179_v6  ;;  %1703 = vmatpush3.bf16.msra.mxu0 %v2264_v42 }
 0x1b4   :  { %1726 = vmatprep.subr.bf16.mxu1 %v2129_v0  ;;  %1704 = vmatprep.subr.bf16.mxu0 %v2129_v0 }
 0x1b7   :  { %1727 = vmatpush3.bf16.msra.mxu1 %v2183_v8  ;;  %1705 = vmatpush3.bf16.msra.mxu0 %v2268_v43 }
 0x1b8   :  { %1728 = vmatprep.subr.bf16.mxu1 %v2129_v0  ;;  %1706 = vmatprep.subr.bf16.mxu0 %v2129_v0 }
 0x1bb   :  { %1729 = vmatpush3.bf16.msra.mxu1 %v2187_v10  ;;  %1707 = vmatpush3.bf16.msra.mxu0 %v2276_v46 }
 0x1bc   :  { %1730 = vmatprep.subr.bf16.mxu1 %v2129_v0  ;;  %1708 = vmatprep.subr.bf16.mxu0 %v2129_v0 }
 0x1bf   :  { %1731 = vmatpush3.bf16.msra.mxu1 %v2196_v14  ;;  %1709 = vmatpush3.bf16.msra.mxu0 %v2292_v52 }
 0x1c0   :  { %1732 = vmatprep.subr.bf16.mxu1 %v2129_v0  ;;  %1710 = vmatprep.subr.bf16.mxu0 %v2129_v0 }
 0x1c3   :  { %1733 = vmatpush3.bf16.msra.mxu1 %v2200_v17  ;;  %1711 = vmatpush3.bf16.msra.mxu0 %v2299_v56 }
 0x1c4   :  { %1734 = vmatprep.subr.bf16.mxu1 %v2129_v0  ;;  %1712 = vmatprep.subr.bf16.mxu0 %v2129_v0 }
 0x1c7   :  { %1735 = vmatpush3.bf16.msra.mxu1 %v2204_v19  ;;  %1713 = vmatpush3.bf16.msra.mxu0 %v2308_v57 }
 0x1c8   :  { %1714 = vmatprep.subr.bf16.mxu0 %v2129_v0  ;;  %1760 = vmatprep.subr.bf16.mxu1 %v2129_v0 }
 0x1cb   :  { %1715 = vmatpush3.bf16.msra.mxu0 %v2313_v58 }
 0x1cc   :  { %1740 = vmatprep.subr.bf16.mxu0 %v2129_v0 }
 0x27d   :  { %v484_v26 = vpop.f32.mrb[4].mxu1 }
 0x27e   :  { %v490_v29 = vadd.f32 %v484_v26, %v163_v25  ;;  %v1698_v30 = vpop.f32.mrb[5].mxu1 }
 0x27f   :  { %v487_v31 = vpop.f32.mrb[6].mxu1 }
 0x280   :  { %v491_v32 = vmul.f32 %v490_v29, %v2259_v37  ;;  %v1699_v33 = vpop.f32.mrb[7].mxu1 }
 0x281   :  { %v425_v35 = vpop.f32.mrb[8].mxu0 }
 0x282   :  { %v431_v36 = vmul.f32 %v425_v35, %v2259_v37  ;;  %v1678_v39 = vpop.f32.mrb[9].mxu0  ;;  %2025 = vtanh.f32 %v491_v32  ;;  %v168_v32 = vadd.f32 %v2248_v28, %v2246_v27 }
 0x283   :  { %v428_v40 = vpop.f32.mrb[10].mxu0 }
 0x284   :  { %2027 = vtanh.f32 %v431_v36  ;;  %v1679_v41 = vpop.f32.mrb[11].mxu0 }
 0x28c   :  { %v2026_v44 = vpop.eup %2025 }
 0x28d   :  { %v493_v49 = vmul.f32 %v2026_v44, %v2259_v37 }
 0x28e   :  { %v2028_v47 = vpop.eup %2027 }
 0x28f   :  { %v433_v48 = vmul.f32 %v2028_v47, %v2259_v37  ;;  %v494_v50 = vadd.f32 %v493_v49, %v2274_v45 }
 0x291   :  { %v434_v38 = vadd.f32 %v433_v48, %v2274_v45 }
 0x293   :  { %437 = vrot.lane.b32.xlu1 %v434_v38, %s2127_s22  ;;  %435 = vrot.lane.b32.xlu0 %v434_v38, %s2134_s17 }
 0x297   :  { %495 = vrot.lane.b32.xlu1 %v494_v50, %s2134_s17  ;;  %439 = vrot.lane.b32.xlu0 %v434_v38, %s2133_s16 }
 0x29b   :  { %499 = vrot.lane.b32.xlu1 %v494_v50, %s2133_s16  ;;  %497 = vrot.lane.b32.xlu0 %v494_v50, %s2127_s22 }
 0x305   :  { %v438_v51 = vpop.permute.xlu1 %437  ;;  %v436_v53 = vpop.permute.xlu0 %435 }
 0x306   :  { %v442_v54 = vmul.f32 %v438_v51, %v434_v38  ;;  %v441_v55 = vmul.f32 0.0, %v436_v53 }
 0x308   :  { %v2388_v59 = vadd.f32 %v442_v54, %v441_v55 }
 0x309   :  { %v440_v60 = vpop.permute.xlu0 %439  ;;  %v496_v61 = vpop.permute.xlu1 %495 }
 0x30a   :  { %2029 = vtanh.f32 %v2388_v59  ;;  %v501_v1 = vmul.f32 %v496_v61, %v2317_v63 }
 0x30d   :  { %v498_v62 = vpop.permute.xlu0 %497  ;;  %v500_v16 = vpop.permute.xlu1 %499 }
 0x30e   :  { %v502_v3 = vmul.f32 %v498_v62, %v494_v50 }
 0x310   :  { %v2392_v7 = vadd.f32 %v502_v3, %v501_v1 }
 0x312   :  { %2031 = vtanh.f32 %v2392_v7 }
 0x314   :  { %v2030_v9 = vpop.eup %2029 }
 0x315   :  { %v445_v11 = vmul.f32 %v2030_v9, %v440_v60 }
 0x317   :  { %v446_v13 = vmul.f32 %v2322_v5, %v445_v11 }
 0x319   :  { %507 = vrot.lane.b32.xlu0 %v446_v13, %s2133_s16 }
 0x31c   :  { %v2032_v15 = vpop.eup %2031 }
 0x31d   :  { %v505_v18 = vmul.f32 %v2032_v15, %v500_v16 }
 0x31f   :  { %v506_v25 = vmul.f32 %v2322_v5, %v505_v18 }
 0x321   :  { %v570_v26 = vpack.c.bf16 %v506_v25, %v506_v25 }
 0x323   :  { %1737 = vmatmul.mubr.bf16.vlgmr.msra.gmra.mrb[8].mxu1 %v570_v26 }
 0x324   :  { %1761 = vmatpush3.bf16.msra.mxu1 %v2172_v2  ;;  %1776 = vmatprep.mubr.msk.bf16.mxu1 %vm2130_vm0, %v2129_v0 }
 0x325   :  { %1762 = vmatprep.subr.bf16.mxu1 %v2129_v0 }
 0x328   :  { %1763 = vmatpush3.bf16.msra.mxu1 %v2175_v4 }
 0x329   :  { %1764 = vmatprep.subr.bf16.mxu1 %v2129_v0 }
 0x32c   :  { %1765 = vmatpush3.bf16.msra.mxu1 %v2179_v6 }
 0x32d   :  { %1766 = vmatprep.subr.bf16.mxu1 %v2129_v0 }
 0x330   :  { %1767 = vmatpush3.bf16.msra.mxu1 %v2183_v8 }
 0x331   :  { %1768 = vmatprep.subr.bf16.mxu1 %v2129_v0 }
 0x334   :  { %1769 = vmatpush3.bf16.msra.mxu1 %v2187_v10 }
 0x335   :  { %1770 = vmatprep.subr.bf16.mxu1 %v2129_v0 }
 0x338   :  { %1771 = vmatpush3.bf16.msra.mxu1 %v2196_v14 }
 0x339   :  { %1772 = vmatprep.subr.bf16.mxu1 %v2129_v0 }
 0x33c   :  { %1773 = vmatpush3.bf16.msra.mxu1 %v2200_v17 }
 0x33d   :  { %1774 = vmatprep.subr.bf16.mxu1 %v2129_v0 }
 0x340   :  { %1775 = vmatpush3.bf16.msra.mxu1 %v2204_v19 }
 0x341   :  { %1800 = vmatprep.subr.bf16.mxu1 %v2129_v0 }
 0x38b   :  { %v508_v63 = vpop.permute.xlu0 %507 }
 0x38c   :  { %v509_v29 = vadd.f32 %v508_v63, %v506_v25 }
 0x38e   :  { %v510_v30 = vadd.f32 %v2327_v12, %v509_v29 }
 0x390   :  { %v511_v31 = vpack.c.bf16 %v510_v30, %v510_v30 }
 0x392   :  { %1717 = vmatmul.mubr.bf16.vlgmr.msra.gmra.mrb[12].mxu0 %v511_v31 }
 0x393   :  { %1741 = vmatpush3.bf16.msra.mxu0 %v2235_v24  ;;  %1756 = vmatprep.mubr.msk.bf16.mxu0 %vm2130_vm0, %v2129_v0 }
 0x394   :  { %1742 = vmatprep.subr.bf16.mxu0 %v2129_v0 }
 0x397   :  { %1743 = vmatpush3.bf16.msra.mxu0 %v2264_v42 }
 0x398   :  { %1744 = vmatprep.subr.bf16.mxu0 %v2129_v0 }
 0x39b   :  { %1745 = vmatpush3.bf16.msra.mxu0 %v2268_v43 }
 0x39c   :  { %1746 = vmatprep.subr.bf16.mxu0 %v2129_v0 }
 0x39f   :  { %1747 = vmatpush3.bf16.msra.mxu0 %v2276_v46 }
 0x3a0   :  { %1748 = vmatprep.subr.bf16.mxu0 %v2129_v0 }
 0x3a3   :  { %1749 = vmatpush3.bf16.msra.mxu0 %v2292_v52 }
 0x3a4   :  { %1750 = vmatprep.subr.bf16.mxu0 %v2129_v0 }
 0x3a7   :  { %1751 = vmatpush3.bf16.msra.mxu0 %v2299_v56 }
 0x3a8   :  { %1752 = vmatprep.subr.bf16.mxu0 %v2129_v0 }
 0x3ab   :  { %1753 = vmatpush3.bf16.msra.mxu0 %v2308_v57 }
 0x3ac   :  { %1754 = vmatprep.subr.bf16.mxu0 %v2129_v0 }
 0x3af   :  { %1755 = vmatpush3.bf16.msra.mxu0 %v2313_v58 }
 0x3b0   :  { %1780 = vmatprep.subr.bf16.mxu0 %v2129_v0 }
 0x3f6   :  { %v605_v33 = vpop.f32.mrb[8].mxu1 }
 0x3f7   :  { %v611_v35 = vadd.f32 %v605_v33, %v168_v32  ;;  %v1738_v36 = vpop.f32.mrb[9].mxu1 }
 0x3f8   :  { %v608_v39 = vpop.f32.mrb[10].mxu1 }
 0x3f9   :  { %v1739_v40 = vpop.f32.mrb[11].mxu1  ;;  %v612_v41 = vmul.f32 %v611_v35, %v2259_v37  ;;  %v171_v39 = vadd.f32 %v2255_v34, %v2246_v27 }
 0x3fb   :  { %2033 = vtanh.f32 %v612_v41 }
 0x405   :  { %v2034_v50 = vpop.eup %2033 }
 0x406   :  { %v614_v54 = vmul.f32 %v2034_v50, %v2259_v37 }
 0x408   :  { %v615_v55 = vadd.f32 %v614_v54, %v2274_v45 }
 0x465   :  { %v546_v44 = vpop.f32.mrb[12].mxu0 }
 0x466   :  { %v552_v47 = vmul.f32 %v546_v44, %v2259_v37  ;;  %v1718_v48 = vpop.f32.mrb[13].mxu0 }
 0x467   :  { %v549_v38 = vpop.f32.mrb[14].mxu0 }
 0x468   :  { %2035 = vtanh.f32 %v552_v47  ;;  %v1719_v49 = vpop.f32.mrb[15].mxu0 }
 0x472   :  { %v2036_v51 = vpop.eup %2035 }
 0x473   :  { %v554_v53 = vmul.f32 %v2036_v51, %v2259_v37 }
 0x475   :  { %v555_v28 = vadd.f32 %v554_v53, %v2274_v45 }
 0x477   :  { %558 = vrot.lane.b32.xlu0 %v555_v28, %s2127_s22  ;;  %556 = vrot.lane.b32.xlu1 %v555_v28, %s2134_s17 }
 0x47b   :  { %616 = vrot.lane.b32.xlu0 %v615_v55, %s2134_s17  ;;  %560 = vrot.lane.b32.xlu1 %v555_v28, %s2133_s16 }
 0x47f   :  { %620 = vrot.lane.b32.xlu0 %v615_v55, %s2133_s16  ;;  %618 = vrot.lane.b32.xlu1 %v615_v55, %s2127_s22 }
 0x4e9   :  { %v559_v60 = vpop.permute.xlu0 %558  ;;  %v557_v61 = vpop.permute.xlu1 %556 }
 0x4ea   :  { %v563_v62 = vmul.f32 %v559_v60, %v555_v28  ;;  %v562_v1 = vmul.f32 %v557_v61, %v2388_v59 }
 0x4ec   :  { %v2450_v3 = vadd.f32 %v563_v62, %v562_v1 }
 0x4ed   :  { %v561_v9 = vpop.permute.xlu1 %560  ;;  %v617_v11 = vpop.permute.xlu0 %616 }
 0x4ee   :  { %2037 = vtanh.f32 %v2450_v3  ;;  %v622_v15 = vmul.f32 %v617_v11, %v2392_v7 }
 0x4f1   :  { %v619_v13 = vpop.permute.xlu1 %618  ;;  %v621_v29 = vpop.permute.xlu0 %620 }
 0x4f2   :  { %v623_v16 = vmul.f32 %v619_v13, %v615_v55 }
 0x4f4   :  { %v2454_v18 = vadd.f32 %v623_v16, %v622_v15 }
 0x4f6   :  { %2039 = vtanh.f32 %v2454_v18 }
 0x4f8   :  { %v2038_v25 = vpop.eup %2037 }
 0x4f9   :  { %v566_v26 = vmul.f32 %v2038_v25, %v561_v9 }
 0x4fb   :  { %v567_v63 = vmul.f32 %v2322_v5, %v566_v26 }
 0x4fd   :  { %628 = vrot.lane.b32.xlu1 %v567_v63, %s2133_s16 }
 0x500   :  { %v2040_v59 = vpop.eup %2039 }
 0x501   :  { %v626_v30 = vmul.f32 %v2040_v59, %v621_v29 }
 0x503   :  { %v627_v31 = vmul.f32 %v2322_v5, %v626_v30 }
 0x505   :  { %v691_v32 = vpack.c.bf16 %v627_v31, %v627_v31 }
 0x507   :  { %1777 = vmatmul.mubr.bf16.vlgmr.msra.gmra.mrb[12].mxu1 %v691_v32 }
 0x508   :  { %1801 = vmatpush3.bf16.msra.mxu1 %v2172_v2  ;;  %1816 = vmatprep.mubr.msk.bf16.mxu1 %vm2130_vm0, %v2129_v0 }
 0x509   :  { %1802 = vmatprep.subr.bf16.mxu1 %v2129_v0 }
 0x50c   :  { %1803 = vmatpush3.bf16.msra.mxu1 %v2175_v4 }
 0x50d   :  { %1804 = vmatprep.subr.bf16.mxu1 %v2129_v0 }
 0x510   :  { %1805 = vmatpush3.bf16.msra.mxu1 %v2179_v6 }
 0x511   :  { %1806 = vmatprep.subr.bf16.mxu1 %v2129_v0 }
 0x514   :  { %1807 = vmatpush3.bf16.msra.mxu1 %v2183_v8 }
 0x515   :  { %1808 = vmatprep.subr.bf16.mxu1 %v2129_v0 }
 0x518   :  { %1809 = vmatpush3.bf16.msra.mxu1 %v2187_v10 }
 0x519   :  { %1810 = vmatprep.subr.bf16.mxu1 %v2129_v0 }
 0x51c   :  { %1811 = vmatpush3.bf16.msra.mxu1 %v2196_v14 }
 0x51d   :  { %1812 = vmatprep.subr.bf16.mxu1 %v2129_v0 }
 0x520   :  { %1813 = vmatpush3.bf16.msra.mxu1 %v2200_v17 }
 0x521   :  { %1814 = vmatprep.subr.bf16.mxu1 %v2129_v0 }
 0x524   :  { %1815 = vmatpush3.bf16.msra.mxu1 %v2204_v19 }
 0x525   :  { %1840 = vmatprep.subr.bf16.mxu1 %v2129_v0 }
 0x56f   :  { %v629_v7 = vpop.permute.xlu1 %628 }
 0x570   :  { %v630_v33 = vadd.f32 %v629_v7, %v627_v31 }
 0x572   :  { %v631_v35 = vadd.f32 %v2327_v12, %v630_v33 }
 0x574   :  { %v632_v36 = vpack.c.bf16 %v631_v35, %v631_v35 }
 0x576   :  { %1757 = vmatmul.mubr.bf16.vlgmr.msra.gmra.mrb[16].mxu0 %v632_v36 }
 0x577   :  { %1781 = vmatpush3.bf16.msra.mxu0 %v2235_v24  ;;  %1796 = vmatprep.mubr.msk.bf16.mxu0 %vm2130_vm0, %v2129_v0 }
 0x578   :  { %1782 = vmatprep.subr.bf16.mxu0 %v2129_v0 }
 0x57b   :  { %1783 = vmatpush3.bf16.msra.mxu0 %v2264_v42 }
 0x57c   :  { %1784 = vmatprep.subr.bf16.mxu0 %v2129_v0 }
 0x57f   :  { %1785 = vmatpush3.bf16.msra.mxu0 %v2268_v43 }
 0x580   :  { %1786 = vmatprep.subr.bf16.mxu0 %v2129_v0 }
 0x583   :  { %1787 = vmatpush3.bf16.msra.mxu0 %v2276_v46 }
 0x584   :  { %1788 = vmatprep.subr.bf16.mxu0 %v2129_v0 }
 0x587   :  { %1789 = vmatpush3.bf16.msra.mxu0 %v2292_v52 }
 0x588   :  { %1790 = vmatprep.subr.bf16.mxu0 %v2129_v0 }
 0x58b   :  { %1791 = vmatpush3.bf16.msra.mxu0 %v2299_v56 }
 0x58c   :  { %1792 = vmatprep.subr.bf16.mxu0 %v2129_v0 }
 0x58f   :  { %1793 = vmatpush3.bf16.msra.mxu0 %v2308_v57 }
 0x590   :  { %1794 = vmatprep.subr.bf16.mxu0 %v2129_v0 }
 0x593   :  { %1795 = vmatpush3.bf16.msra.mxu0 %v2313_v58 }
 0x594   :  { %1820 = vmatprep.subr.bf16.mxu0 %v2129_v0 }
 0x5da   :  { %v726_v40 = vpop.f32.mrb[12].mxu1 }
 0x5db   :  { %v732_v41 = vadd.f32 %v726_v40, %v171_v39  ;;  %v1778_v44 = vpop.f32.mrb[13].mxu1 }
 0x5dc   :  { %v729_v47 = vpop.f32.mrb[14].mxu1 }
 0x5dd   :  { %v1779_v48 = vpop.f32.mrb[15].mxu1  ;;  %v733_v38 = vmul.f32 %v732_v41, %v2259_v37 }
 0x5df   :  { %2041 = vtanh.f32 %v733_v38 }
 0x5e9   :  { %v2042_v54 = vpop.eup %2041 }
 0x5ea   :  { %v735_v61 = vmul.f32 %v2042_v54, %v2259_v37 }
 0x5ec   :  { %v736_v62 = vadd.f32 %v735_v61, %v2274_v45 }
 0x649   :  { %v667_v49 = vpop.f32.mrb[16].mxu0 }
 0x64a   :  { %v673_v50 = vmul.f32 %v667_v49, %v2259_v37  ;;  %v1758_v51 = vpop.f32.mrb[17].mxu0 }
 0x64b   :  { %v670_v53 = vpop.f32.mrb[18].mxu0 }
 0x64c   :  { %2043 = vtanh.f32 %v673_v50  ;;  %v1759_v28 = vpop.f32.mrb[19].mxu0 }
 0x656   :  { %v2044_v55 = vpop.eup %2043 }
 0x657   :  { %v675_v60 = vmul.f32 %v2044_v55, %v2259_v37 }
 0x659   :  { %v676_v34 = vadd.f32 %v675_v60, %v2274_v45 }
 0x65b   :  { %679 = vrot.lane.b32.xlu1 %v676_v34, %s2127_s22  ;;  %677 = vrot.lane.b32.xlu0 %v676_v34, %s2134_s17 }
 0x65f   :  { %737 = vrot.lane.b32.xlu1 %v736_v62, %s2134_s17  ;;  %681 = vrot.lane.b32.xlu0 %v676_v34, %s2133_s16 }
 0x663   :  { %741 = vrot.lane.b32.xlu1 %v736_v62, %s2133_s16  ;;  %739 = vrot.lane.b32.xlu0 %v736_v62, %s2127_s22 }
 0x6cd   :  { %v680_v1 = vpop.permute.xlu1 %679  ;;  %v678_v9 = vpop.permute.xlu0 %677 }
 0x6ce   :  { %v684_v11 = vmul.f32 %v680_v1, %v676_v34  ;;  %v683_v13 = vmul.f32 %v678_v9, %v2450_v3 }
 0x6d0   :  { %v2512_v15 = vadd.f32 %v684_v11, %v683_v13 }
 0x6d1   :  { %v682_v16 = vpop.permute.xlu0 %681  ;;  %v738_v25 = vpop.permute.xlu1 %737 }
 0x6d2   :  { %2045 = vtanh.f32 %v2512_v15  ;;  %v743_v63 = vmul.f32 %v738_v25, %v2454_v18 }
 0x6d5   :  { %v740_v26 = vpop.permute.xlu0 %739  ;;  %v742_v7 = vpop.permute.xlu1 %741 }
 0x6d6   :  { %v744_v59 = vmul.f32 %v740_v26, %v736_v62 }
 0x6d8   :  { %v2516_v29 = vadd.f32 %v744_v59, %v743_v63 }
 0x6da   :  { %2047 = vtanh.f32 %v2516_v29 }
 0x6dc   :  { %v2046_v30 = vpop.eup %2045 }
 0x6dd   :  { %v687_v31 = vmul.f32 %v2046_v30, %v682_v16 }
 0x6df   :  { %v688_v32 = vmul.f32 %v2322_v5, %v687_v31 }
 0x6e1   :  { %749 = vrot.lane.b32.xlu0 %v688_v32, %s2133_s16 }
 0x6e4   :  { %v2048_v3 = vpop.eup %2047 }
 0x6e5   :  { %v747_v33 = vmul.f32 %v2048_v3, %v742_v7 }
 0x6e7   :  { %v748_v35 = vmul.f32 %v2322_v5, %v747_v33  ;;  %v2584_v33 = vld [vmem:[#allocation3 + $0x40] sm:$0xff]  }
 0x6e9   :  { %v812_v36 = vpack.c.bf16 %v748_v35, %v748_v35 }
 0x6eb   :  { %1817 = vmatmul.mubr.bf16.vlgmr.msra.gmra.mrb[16].mxu1 %v812_v36  ;;  %v2598_v36 = vld [vmem:[#allocation3 + $0x58] sm:$0xff]  }
 0x6ec   :  { %1841 = vmatpush3.bf16.msra.mxu1 %v2172_v2  ;;  %1856 = vmatprep.mubr.msk.bf16.mxu1 %vm2130_vm0, %v2129_v0 }
 0x6ed   :  { %1842 = vmatprep.subr.bf16.mxu1 %v2129_v0 }
 0x6f0   :  { %1843 = vmatpush3.bf16.msra.mxu1 %v2175_v4 }
 0x6f1   :  { %1844 = vmatprep.subr.bf16.mxu1 %v2129_v0 }
 0x6f4   :  { %1845 = vmatpush3.bf16.msra.mxu1 %v2179_v6 }
 0x6f5   :  { %1846 = vmatprep.subr.bf16.mxu1 %v2129_v0 }
 0x6f8   :  { %1847 = vmatpush3.bf16.msra.mxu1 %v2183_v8 }
 0x6f9   :  { %1848 = vmatprep.subr.bf16.mxu1 %v2129_v0 }
 0x6fc   :  { %1849 = vmatpush3.bf16.msra.mxu1 %v2187_v10  ;;  %v176_v10 = vadd.f32 %v2246_v27, %v2368_v21 }
 0x6fd   :  { %1850 = vmatprep.subr.bf16.mxu1 %v2129_v0 }
 0x700   :  { %1851 = vmatpush3.bf16.msra.mxu1 %v2196_v14 }
 0x701   :  { %1852 = vmatprep.subr.bf16.mxu1 %v2129_v0 }
 0x704   :  { %1853 = vmatpush3.bf16.msra.mxu1 %v2200_v17 }
 0x705   :  { %1854 = vmatprep.subr.bf16.mxu1 %v2129_v0 }
 0x708   :  { %1855 = vmatpush3.bf16.msra.mxu1 %v2204_v19 }
 0x709   :  { %1880 = vmatprep.subr.bf16.mxu1 %v2129_v0 }
 0x753   :  { %v750_v2 = vpop.permute.xlu0 %749 }
 0x754   :  { %v751_v4 = vadd.f32 %v750_v2, %v748_v35  ;;  %v2594_v35 = vld [vmem:[#allocation3 + $0x50] sm:$0xff]   ;;  %v2602_v2 = vld [vmem:[#allocation3 + $0x60] sm:$0xff]  }
 0x756   :  { %v752_v6 = vadd.f32 %v2327_v12, %v751_v4  ;;  %v2606_v4 = vld [vmem:[#allocation3 + $0x68] sm:$0xff]  }
 0x758   :  { %v753_v8 = vpack.c.bf16 %v752_v6, %v752_v6 }
 0x75a   :  { %1797 = vmatmul.mubr.bf16.vlgmr.msra.gmra.mrb[20].mxu0 %v753_v8 }
 0x75b   :  { %1821 = vmatpush3.bf16.msra.mxu0 %v2235_v24  ;;  %1836 = vmatprep.mubr.msk.bf16.mxu0 %vm2130_vm0, %v2129_v0 }
 0x75c   :  { %1822 = vmatprep.subr.bf16.mxu0 %v2129_v0 }
 0x75f   :  { %1823 = vmatpush3.bf16.msra.mxu0 %v2264_v42 }
 0x760   :  { %1824 = vmatprep.subr.bf16.mxu0 %v2129_v0 }
 0x763   :  { %1825 = vmatpush3.bf16.msra.mxu0 %v2268_v43 }
 0x764   :  { %1826 = vmatprep.subr.bf16.mxu0 %v2129_v0 }
 0x767   :  { %1827 = vmatpush3.bf16.msra.mxu0 %v2276_v46 }
 0x768   :  { %1828 = vmatprep.subr.bf16.mxu0 %v2129_v0 }
 0x76b   :  { %1829 = vmatpush3.bf16.msra.mxu0 %v2292_v52 }
 0x76c   :  { %1830 = vmatprep.subr.bf16.mxu0 %v2129_v0 }
 0x76f   :  { %1831 = vmatpush3.bf16.msra.mxu0 %v2299_v56 }
 0x770   :  { %1832 = vmatprep.subr.bf16.mxu0 %v2129_v0 }
 0x773   :  { %1833 = vmatpush3.bf16.msra.mxu0 %v2308_v57 }
 0x774   :  { %1834 = vmatprep.subr.bf16.mxu0 %v2129_v0 }
 0x777   :  { %1835 = vmatpush3.bf16.msra.mxu0 %v2313_v58 }
 0x778   :  { %1860 = vmatprep.subr.bf16.mxu0 %v2129_v0 }
 0x7be   :  { %v847_v14 = vpop.f32.mrb[16].mxu1 }
 0x7bf   :  { %v853_v18 = vadd.f32 %v847_v14, %v176_v10  ;;  %v1818_v39 = vpop.f32.mrb[17].mxu1 }
 0x7c0   :  { %v850_v40 = vpop.f32.mrb[18].mxu1 }
 0x7c1   :  { %v1819_v41 = vpop.f32.mrb[19].mxu1  ;;  %v854_v44 = vmul.f32 %v853_v18, %v2259_v37 }
 0x7c3   :  { %2049 = vtanh.f32 %v854_v44 }
 0x7cd   :  { %v2050_v51 = vpop.eup %2049 }
 0x7ce   :  { %v856_v54 = vmul.f32 %v2050_v51, %v2259_v37 }
 0x7d0   :  { %v857_v55 = vadd.f32 %v856_v54, %v2274_v45 }
 0x82d   :  { %v788_v47 = vpop.f32.mrb[20].mxu0 }
 0x82e   :  { %v794_v48 = vmul.f32 %v788_v47, %v2259_v37  ;;  %v1798_v38 = vpop.f32.mrb[21].mxu0 }
 0x82f   :  { %v791_v49 = vpop.f32.mrb[22].mxu0 }
 0x830   :  { %2051 = vtanh.f32 %v794_v48  ;;  %v1799_v50 = vpop.f32.mrb[23].mxu0 }
 0x83a   :  { %v2052_v53 = vpop.eup %2051 }
 0x83b   :  { %v796_v28 = vmul.f32 %v2052_v53, %v2259_v37 }
 0x83d   :  { %v797_v21 = vadd.f32 %v796_v28, %v2274_v45 }
 0x83f   :  { %800 = vrot.lane.b32.xlu0 %v797_v21, %s2127_s22  ;;  %798 = vrot.lane.b32.xlu1 %v797_v21, %s2134_s17 }
 0x843   :  { %858 = vrot.lane.b32.xlu0 %v857_v55, %s2134_s17  ;;  %802 = vrot.lane.b32.xlu1 %v797_v21, %s2133_s16 }
 0x847   :  { %862 = vrot.lane.b32.xlu0 %v857_v55, %s2133_s16  ;;  %860 = vrot.lane.b32.xlu1 %v857_v55, %s2127_s22 }
 0x8b1   :  { %v801_v60 = vpop.permute.xlu0 %800  ;;  %v799_v34 = vpop.permute.xlu1 %798 }
 0x8b2   :  { %v805_v61 = vmul.f32 %v801_v60, %v797_v21  ;;  %v804_v62 = vmul.f32 %v799_v34, %v2512_v15 }
 0x8b4   :  { %v2574_v1 = vadd.f32 %v805_v61, %v804_v62 }
 0x8b5   :  { %v803_v9 = vpop.permute.xlu1 %802  ;;  %v859_v11 = vpop.permute.xlu0 %858 }
 0x8b6   :  { %2053 = vtanh.f32 %v2574_v1  ;;  %v864_v16 = vmul.f32 %v859_v11, %v2516_v29  ;;  %v2590_v29 = vld [vmem:[#allocation3 + $0x48] sm:$0xff]  }
 0x8b9   :  { %v861_v13 = vpop.permute.xlu1 %860  ;;  %v863_v31 = vpop.permute.xlu0 %862 }
 0x8ba   :  { %v865_v25 = vmul.f32 %v861_v13, %v857_v55 }
 0x8bc   :  { %v2578_v26 = vadd.f32 %v865_v25, %v864_v16 }
 0x8be   :  { %2055 = vtanh.f32 %v2578_v26 }
 0x8c0   :  { %v2054_v63 = vpop.eup %2053 }
 0x8c1   :  { %v808_v59 = vmul.f32 %v2054_v63, %v803_v9 }
 0x8c3   :  { %v809_v30 = vmul.f32 %v2322_v5, %v808_v59 }
 0x8c5   :  { %870 = vrot.lane.b32.xlu1 %v809_v30, %s2133_s16  ;;  %v2092_v30 = vld [vmem:[#allocation3 + $0x78] sm:$0xff]  }
 0x8c8   :  { %v2056_v15 = vpop.eup %2055 }
 0x8c9   :  { %v868_v32 = vmul.f32 %v2056_v15, %v863_v31 }
 0x8cb   :  { %v869_v3 = vmul.f32 %v2322_v5, %v868_v32 }
 0x8cd   :  { %v933_v7 = vpack.c.bf16 %v869_v3, %v869_v3 }
 0x8cf   :  { %1857 = vmatmul.mubr.bf16.vlgmr.msra.gmra.mrb[20].mxu1 %v933_v7  ;;  %v2675_v7 = vld [vmem:[#allocation3 + $0x80] sm:$0xff]  }
 0x8d0   :  { %1881 = vmatpush3.bf16.msra.mxu1 %v2584_v33  ;;  %1896 = vmatprep.mubr.msk.bf16.mxu1 %vm2130_vm0, %v2129_v0 }
 0x8d1   :  { %1882 = vmatprep.subr.bf16.mxu1 %v2129_v0 }
 0x8d4   :  { %1883 = vmatpush3.bf16.msra.mxu1 %v2590_v29 }
 0x8d5   :  { %1884 = vmatprep.subr.bf16.mxu1 %v2129_v0 }
 0x8d8   :  { %1885 = vmatpush3.bf16.msra.mxu1 %v2594_v35 }
 0x8d9   :  { %1886 = vmatprep.subr.bf16.mxu1 %v2129_v0 }
 0x8dc   :  { %1887 = vmatpush3.bf16.msra.mxu1 %v2598_v36 }
 0x8dd   :  { %1888 = vmatprep.subr.bf16.mxu1 %v2129_v0 }
 0x8e0   :  { %1889 = vmatpush3.bf16.msra.mxu1 %v2602_v2 }
 0x8e1   :  { %1890 = vmatprep.subr.bf16.mxu1 %v2129_v0 }
 0x8e4   :  { %1891 = vmatpush3.bf16.msra.mxu1 %v2606_v4 }
 0x8e5   :  { %1892 = vmatprep.subr.bf16.mxu1 %v2129_v0 }
 0x8e8   :  { %1893 = vmatpush3.bf16.msra.mxu1 %v2200_v17  ;;  %v179_v17 = vadd.f32 %v2246_v27, %v2372_v23 }
 0x8e9   :  { %1894 = vmatprep.subr.bf16.mxu1 %v2129_v0 }
 0x8ec   :  { %1895 = vmatpush3.bf16.msra.mxu1 %v2204_v19 }
 0x8ed   :  { %1920 = vmatprep.subr.bf16.mxu1 %v2129_v0 }
 0x937   :  { %v871_v6 = vpop.permute.xlu1 %870 }
 0x938   :  { %v872_v8 = vadd.f32 %v871_v6, %v869_v3 }
 0x93a   :  { %v873_v10 = vadd.f32 %v2327_v12, %v872_v8 }
 0x93c   :  { %v874_v14 = vpack.c.bf16 %v873_v10, %v873_v10 }
 0x93e   :  { %1837 = vmatmul.mubr.bf16.vlgmr.msra.gmra.mrb[24].mxu0 %v874_v14 }
 0x93f   :  { %1861 = vmatpush3.bf16.msra.mxu0 %v2235_v24  ;;  %1876 = vmatprep.mubr.msk.bf16.mxu0 %vm2130_vm0, %v2129_v0 }
 0x940   :  { %1862 = vmatprep.subr.bf16.mxu0 %v2129_v0 }
 0x943   :  { %1863 = vmatpush3.bf16.msra.mxu0 %v2264_v42 }
 0x944   :  { %1864 = vmatprep.subr.bf16.mxu0 %v2129_v0 }
 0x947   :  { %1865 = vmatpush3.bf16.msra.mxu0 %v2268_v43 }
 0x948   :  { %1866 = vmatprep.subr.bf16.mxu0 %v2129_v0 }
 0x94b   :  { %1867 = vmatpush3.bf16.msra.mxu0 %v2276_v46 }
 0x94c   :  { %1868 = vmatprep.subr.bf16.mxu0 %v2129_v0 }
 0x94f   :  { %1869 = vmatpush3.bf16.msra.mxu0 %v2292_v52 }
 0x950   :  { %1870 = vmatprep.subr.bf16.mxu0 %v2129_v0 }
 0x953   :  { %1871 = vmatpush3.bf16.msra.mxu0 %v2299_v56 }
 0x954   :  { %1872 = vmatprep.subr.bf16.mxu0 %v2129_v0 }
 0x957   :  { %1873 = vmatpush3.bf16.msra.mxu0 %v2308_v57 }
 0x958   :  { %1874 = vmatprep.subr.bf16.mxu0 %v2129_v0 }
 0x95b   :  { %1875 = vmatpush3.bf16.msra.mxu0 %v2313_v58 }
 0x95c   :  { %1900 = vmatprep.subr.bf16.mxu0 %v2129_v0 }
 0x9a2   :  { %v968_v19 = vpop.f32.mrb[20].mxu1 }
 0x9a3   :  { %v974_v24 = vadd.f32 %v968_v19, %v179_v17  ;;  %v1858_v42 = vpop.f32.mrb[21].mxu1 }
 0x9a4   :  { %v971_v43 = vpop.f32.mrb[22].mxu1 }
 0x9a5   :  { %v1859_v46 = vpop.f32.mrb[23].mxu1  ;;  %v975_v52 = vmul.f32 %v974_v24, %v2259_v37 }
 0x9a7   :  { %2057 = vtanh.f32 %v975_v52 }
 0x9b1   :  { %v2058_v47 = vpop.eup %2057 }
 0x9b2   :  { %v977_v23 = vmul.f32 %v2058_v47, %v2259_v37 }
 0x9b4   :  { %v978_v49 = vadd.f32 %v977_v23, %v2274_v45 }
 0xa11   :  { %v909_v18 = vpop.f32.mrb[24].mxu0 }
 0xa12   :  { %v915_v39 = vmul.f32 %v909_v18, %v2259_v37  ;;  %v1838_v40 = vpop.f32.mrb[25].mxu0 }
 0xa13   :  { %v912_v41 = vpop.f32.mrb[26].mxu0 }
 0xa14   :  { %2059 = vtanh.f32 %v915_v39  ;;  %v1839_v44 = vpop.f32.mrb[27].mxu0 }
 0xa1e   :  { %v2060_v48 = vpop.eup %2059 }
 0xa1f   :  { %v917_v38 = vmul.f32 %v2060_v48, %v2259_v37 }
 0xa21   :  { %v918_v27 = vadd.f32 %v917_v38, %v2274_v45 }
 0xa23   :  { %921 = vrot.lane.b32.xlu1 %v918_v27, %s2127_s22  ;;  %919 = vrot.lane.b32.xlu0 %v918_v27, %s2134_s17 }
 0xa27   :  { %979 = vrot.lane.b32.xlu1 %v978_v49, %s2134_s17  ;;  %923 = vrot.lane.b32.xlu0 %v918_v27, %s2133_s16 }
 0xa2b   :  { %983 = vrot.lane.b32.xlu1 %v978_v49, %s2133_s16  ;;  %981 = vrot.lane.b32.xlu0 %v978_v49, %s2127_s22 }
 0xa95   :  { %v922_v50 = vpop.permute.xlu1 %921  ;;  %v920_v51 = vpop.permute.xlu0 %919 }
 0xa96   :  { %v926_v53 = vmul.f32 %v922_v50, %v918_v27  ;;  %v925_v28 = vmul.f32 %v920_v51, %v2574_v1 }
 0xa98   :  { %v2648_v21 = vadd.f32 %v926_v53, %v925_v28 }
 0xa99   :  { %v924_v54 = vpop.permute.xlu0 %923  ;;  %v980_v55 = vpop.permute.xlu1 %979 }
 0xa9a   :  { %2061 = vtanh.f32 %v2648_v21  ;;  %v985_v34 = vmul.f32 %v980_v55, %v2578_v26  ;;  %v2091_v26 = vld [vmem:[#allocation3 + $0x70] sm:$0xff]  }
 0xa9d   :  { %v982_v60 = vpop.permute.xlu0 %981  ;;  %v984_v16 = vpop.permute.xlu1 %983 }
 0xa9e   :  { %v986_v61 = vmul.f32 %v982_v60, %v978_v49 }
 0xaa0   :  { %v2652_v62 = vadd.f32 %v986_v61, %v985_v34 }
 0xaa2   :  { %2063 = vtanh.f32 %v2652_v62 }
 0xaa4   :  { %v2062_v9 = vpop.eup %2061 }
 0xaa5   :  { %v929_v11 = vmul.f32 %v2062_v9, %v924_v54 }
 0xaa7   :  { %v930_v13 = vmul.f32 %v2322_v5, %v929_v11 }
 0xaa9   :  { %991 = vrot.lane.b32.xlu0 %v930_v13, %s2133_s16 }
 0xaac   :  { %v2064_v1 = vpop.eup %2063 }
 0xaad   :  { %v989_v25 = vmul.f32 %v2064_v1, %v984_v16  ;;  %v2099_v1 = vld [vmem:[#allocation3 + $0xa8] sm:$0xff]   ;;  %v2100_v16 = vld [vmem:[#allocation3 + $0xb0] sm:$0xff]  }
 0xaaf   :  { %v990_v63 = vmul.f32 %v2322_v5, %v989_v25  ;;  %v2101_v25 = vld [vmem:[#allocation3 + $0xb8] sm:$0xff]  }
 0xab1   :  { %v1054_v59 = vpack.c.bf16 %v990_v63, %v990_v63 }
 0xab3   :  { %1897 = vmatmul.mubr.bf16.vlgmr.msra.gmra.mrb[24].mxu1 %v1054_v59 }
 0xab4   :  { %1921 = vmatpush3.bf16.msra.mxu1 %v2584_v33  ;;  %1936 = vmatprep.mubr.msk.bf16.mxu1 %vm2130_vm0, %v2129_v0  ;;  %v2681_v33 = vld [vmem:[#allocation3 + $0x88] sm:$0xff]  }
 0xab5   :  { %1922 = vmatprep.subr.bf16.mxu1 %v2129_v0 }
 0xab8   :  { %1923 = vmatpush3.bf16.msra.mxu1 %v2590_v29  ;;  %v2685_v29 = vld [vmem:[#allocation3 + $0x90] sm:$0xff]  }
 0xab9   :  { %1924 = vmatprep.subr.bf16.mxu1 %v2129_v0 }
 0xabc   :  { %1925 = vmatpush3.bf16.msra.mxu1 %v2594_v35  ;;  %v2689_v35 = vld [vmem:[#allocation3 + $0x98] sm:$0xff]  }
 0xabd   :  { %1926 = vmatprep.subr.bf16.mxu1 %v2129_v0 }
 0xac0   :  { %1927 = vmatpush3.bf16.msra.mxu1 %v2598_v36  ;;  %v2693_v36 = vld [vmem:[#allocation3 + $0xa0] sm:$0xff]  }
 0xac1   :  { %1928 = vmatprep.subr.bf16.mxu1 %v2129_v0 }
 0xac4   :  { %1929 = vmatpush3.bf16.msra.mxu1 %v2602_v2  ;;  %v2706_v2 = vld [vmem:[%s2792_s2] ss:$0 sm:$0xff] }
 0xac5   :  { %1930 = vmatprep.subr.bf16.mxu1 %v2129_v0 }
 0xac8   :  { %1931 = vmatpush3.bf16.msra.mxu1 %v2606_v4  ;;  %v184_v4 = vadd.f32 %v2706_v2, %v2366_v20 }
 0xac9   :  { %1932 = vmatprep.subr.bf16.mxu1 %v2129_v0 }
 0xacc   :  { %1933 = vmatpush3.bf16.msra.mxu1 %v2091_v26 }
 0xacd   :  { %1934 = vmatprep.subr.bf16.mxu1 %v2129_v0 }
 0xad0   :  { %1935 = vmatpush3.bf16.msra.mxu1 %v2092_v30 }
 0xad1   :  { %1960 = vmatprep.subr.bf16.mxu1 %v2129_v0 }
 0xb1b   :  { %v992_v15 = vpop.permute.xlu0 %991 }
 0xb1c   :  { %v993_v31 = vadd.f32 %v992_v15, %v990_v63  ;;  %v187_v63 = vadd.f32 %v2706_v2, %v2370_v22 }
 0xb1e   :  { %v994_v32 = vadd.f32 %v2327_v12, %v993_v31 }
 0xb20   :  { %v995_v3 = vpack.c.bf16 %v994_v32, %v994_v32 }
 0xb22   :  { %1877 = vmatmul.mubr.bf16.vlgmr.msra.gmra.mrb[28].mxu0 %v995_v3 }
 0xb23   :  { %1901 = vmatpush3.bf16.msra.mxu0 %v2675_v7  ;;  %1916 = vmatprep.mubr.msk.bf16.mxu0 %vm2130_vm0, %v2129_v0 }
 0xb24   :  { %1902 = vmatprep.subr.bf16.mxu0 %v2129_v0 }
 0xb27   :  { %1903 = vmatpush3.bf16.msra.mxu0 %v2681_v33 }
 0xb28   :  { %1904 = vmatprep.subr.bf16.mxu0 %v2129_v0 }
 0xb2b   :  { %1905 = vmatpush3.bf16.msra.mxu0 %v2685_v29 }
 0xb2c   :  { %1906 = vmatprep.subr.bf16.mxu0 %v2129_v0 }
 0xb2f   :  { %1907 = vmatpush3.bf16.msra.mxu0 %v2689_v35 }
 0xb30   :  { %1908 = vmatprep.subr.bf16.mxu0 %v2129_v0 }
 0xb33   :  { %1909 = vmatpush3.bf16.msra.mxu0 %v2693_v36 }
 0xb34   :  { %1910 = vmatprep.subr.bf16.mxu0 %v2129_v0 }
 0xb37   :  { %1911 = vmatpush3.bf16.msra.mxu0 %v2299_v56 }
 0xb38   :  { %1912 = vmatprep.subr.bf16.mxu0 %v2129_v0 }
 0xb3b   :  { %1913 = vmatpush3.bf16.msra.mxu0 %v2308_v57 }
 0xb3c   :  { %1914 = vmatprep.subr.bf16.mxu0 %v2129_v0 }
 0xb3f   :  { %1915 = vmatpush3.bf16.msra.mxu0 %v2313_v58 }
 0xb40   :  { %1940 = vmatprep.subr.bf16.mxu0 %v2129_v0 }
 0xb86   :  { %v1089_v6 = vpop.f32.mrb[24].mxu1 }
 0xb87   :  { %v1095_v56 = vadd.f32 %v1089_v6, %v184_v4  ;;  %v1898_v8 = vpop.f32.mrb[25].mxu1 }
 0xb88   :  { %v1092_v10 = vpop.f32.mrb[26].mxu1 }
 0xb89   :  { %v1899_v14 = vpop.f32.mrb[27].mxu1  ;;  %v1096_v57 = vmul.f32 %v1095_v56, %v2259_v37 }
 0xb8b   :  { %2065 = vtanh.f32 %v1096_v57 }
 0xb95   :  { %v2066_v43 = vpop.eup %2065 }
 0xb96   :  { %v1098_v18 = vmul.f32 %v2066_v43, %v2259_v37 }
 0xb98   :  { %v1099_v39 = vadd.f32 %v1098_v18, %v2274_v45 }
 0xbf5   :  { %v1030_v17 = vpop.f32.mrb[28].mxu0 }
 0xbf6   :  { %v1036_v58 = vmul.f32 %v1030_v17, %v2259_v37  ;;  %v1878_v19 = vpop.f32.mrb[29].mxu0 }
 0xbf7   :  { %v1033_v24 = vpop.f32.mrb[30].mxu0 }
 0xbf8   :  { %2067 = vtanh.f32 %v1036_v58  ;;  %v1879_v42 = vpop.f32.mrb[31].mxu0 }
 0xc02   :  { %v2068_v46 = vpop.eup %2067 }
 0xc03   :  { %v1038_v52 = vmul.f32 %v2068_v46, %v2259_v37 }
 0xc05   :  { %v1039_v20 = vadd.f32 %v1038_v52, %v2274_v45 }
 0xc07   :  { %1042 = vrot.lane.b32.xlu0 %v1039_v20, %s2127_s22  ;;  %1040 = vrot.lane.b32.xlu1 %v1039_v20, %s2134_s17 }
 0xc0b   :  { %1100 = vrot.lane.b32.xlu0 %v1099_v39, %s2134_s17  ;;  %1044 = vrot.lane.b32.xlu1 %v1039_v20, %s2133_s16 }
 0xc0f   :  { %1104 = vrot.lane.b32.xlu0 %v1099_v39, %s2133_s16  ;;  %1102 = vrot.lane.b32.xlu1 %v1099_v39, %s2127_s22 }
 0xc79   :  { %v1043_v40 = vpop.permute.xlu0 %1042  ;;  %v1041_v41 = vpop.permute.xlu1 %1040 }
 0xc7a   :  { %v1047_v44 = vmul.f32 %v1043_v40, %v1039_v20  ;;  %v1046_v47 = vmul.f32 %v1041_v41, %v2648_v21 }
 0xc7c   :  { %v2723_v48 = vadd.f32 %v1047_v44, %v1046_v47 }
 0xc7d   :  { %v1045_v38 = vpop.permute.xlu1 %1044  ;;  %v1101_v27 = vpop.permute.xlu0 %1100 }
 0xc7e   :  { %2069 = vtanh.f32 %v2723_v48  ;;  %v1106_v49 = vmul.f32 %v1101_v27, %v2652_v62 }
 0xc81   :  { %v1103_v23 = vpop.permute.xlu1 %1102  ;;  %v1105_v55 = vpop.permute.xlu0 %1104 }
 0xc82   :  { %v1107_v50 = vmul.f32 %v1103_v23, %v1099_v39  ;;  %v2013_v23 = vld [vmem:[#allocation3 + $0xc0] sm:$0xff]  }
 0xc84   :  { %v2727_v51 = vadd.f32 %v1107_v50, %v1106_v49  ;;  %v2014_v49 = vld [vmem:[#allocation3 + $0xc8] sm:$0xff]   ;;  %v2015_v50 = vld [vmem:[#allocation3 + $0xd0] sm:$0xff]  }
 0xc86   :  { %2071 = vtanh.f32 %v2727_v51 }
 0xc88   :  { %v2070_v53 = vpop.eup %2069 }
 0xc89   :  { %v1050_v28 = vmul.f32 %v2070_v53, %v1045_v38 }
 0xc8b   :  { %v1051_v54 = vmul.f32 %v2322_v5, %v1050_v28 }
 0xc8d   :  { %1112 = vrot.lane.b32.xlu1 %v1051_v54, %s2133_s16 }
 0xc90   :  { %v2072_v21 = vpop.eup %2071 }
 0xc91   :  { %v1110_v60 = vmul.f32 %v2072_v21, %v1105_v55  ;;  %v2016_v21 = vld [vmem:[#allocation3 + $0xd8] sm:$0xff]   ;;  %v2017_v55 = vld [vmem:[#allocation3 + $0xe0] sm:$0xff]  }
 0xc93   :  { %v1111_v34 = vmul.f32 %v2322_v5, %v1110_v60 }
 0xc95   :  { %v1175_v61 = vpack.c.bf16 %v1111_v34, %v1111_v34 }
 0xc97   :  { %1937 = vmatmul.mubr.bf16.vlgmr.msra.gmra.mrb[28].mxu1 %v1175_v61 }
 0xc98   :  { %1976 = vmatprep.mubr.msk.bf16.mxu1 %vm2130_vm0, %v2129_v0  ;;  %1961 = vmatpush3.bf16.msra.mxu1 %v2013_v23 }
 0xc99   :  { %1962 = vmatprep.subr.bf16.mxu1 %v2129_v0 }
 0xc9c   :  { %1963 = vmatpush3.bf16.msra.mxu1 %v2014_v49 }
 0xc9d   :  { %1964 = vmatprep.subr.bf16.mxu1 %v2129_v0 }
 0xca0   :  { %1965 = vmatpush3.bf16.msra.mxu1 %v2015_v50 }
 0xca1   :  { %1966 = vmatprep.subr.bf16.mxu1 %v2129_v0 }
 0xca4   :  { %1967 = vmatpush3.bf16.msra.mxu1 %v2016_v21 }
 0xca5   :  { %1968 = vmatprep.subr.bf16.mxu1 %v2129_v0 }
 0xca8   :  { %1969 = vmatpush3.bf16.msra.mxu1 %v2017_v55 }
 0xca9   :  { %1970 = vmatprep.subr.bf16.mxu1 %v2129_v0 }
 0xcff   :  { %v1113_v62 = vpop.permute.xlu1 %1112 }
 0xd00   :  { %v1114_v9 = vadd.f32 %v1113_v62, %v1111_v34  ;;  %v2018_v34 = vld [vmem:[#allocation3 + $0xe8] sm:$0xff]  }
 0xd01   :  { %1971 = vmatpush3.bf16.msra.mxu1 %v2018_v34 }
 0xd02   :  { %v1115_v11 = vadd.f32 %v2327_v12, %v1114_v9  ;;  %1972 = vmatprep.subr.bf16.mxu1 %v2129_v0  ;;  %v2019_v9 = vld [vmem:[#allocation3 + $0xf0] sm:$0xff]  }
 0xd04   :  { %v1116_v13 = vpack.c.bf16 %v1115_v11, %v1115_v11  ;;  %v2020_v11 = vld [vmem:[#allocation3 + $0xf8] sm:$0xff]  }
 0xd05   :  { %1973 = vmatpush3.bf16.msra.mxu1 %v2019_v9 }
 0xd06   :  { %1917 = vmatmul.mubr.bf16.vlgmr.msra.gmra.mrb[32].mxu0 %v1116_v13  ;;  %1974 = vmatprep.subr.bf16.mxu1 %v2129_v0 }
 0xd07   :  { %1941 = vmatpush3.bf16.msra.mxu0 %v2675_v7  ;;  %1956 = vmatprep.mubr.msk.bf16.mxu0 %vm2130_vm0, %v2129_v0 }
 0xd08   :  { %1942 = vmatprep.subr.bf16.mxu0 %v2129_v0 }
 0xd09   :  { %1975 = vmatpush3.bf16.msra.mxu1 %v2020_v11 }
 0xd0b   :  { %1943 = vmatpush3.bf16.msra.mxu0 %v2681_v33 }
 0xd0c   :  { %1944 = vmatprep.subr.bf16.mxu0 %v2129_v0 }
 0xd0f   :  { %1945 = vmatpush3.bf16.msra.mxu0 %v2685_v29 }
 0xd10   :  { %1946 = vmatprep.subr.bf16.mxu0 %v2129_v0 }
 0xd13   :  { %1947 = vmatpush3.bf16.msra.mxu0 %v2689_v35 }
 0xd14   :  { %1948 = vmatprep.subr.bf16.mxu0 %v2129_v0 }
 0xd17   :  { %1949 = vmatpush3.bf16.msra.mxu0 %v2693_v36 }
 0xd18   :  { %1950 = vmatprep.subr.bf16.mxu0 %v2129_v0 }
 0xd1b   :  { %1951 = vmatpush3.bf16.msra.mxu0 %v2099_v1 }
 0xd1c   :  { %1952 = vmatprep.subr.bf16.mxu0 %v2129_v0 }
 0xd1f   :  { %1953 = vmatpush3.bf16.msra.mxu0 %v2100_v16 }
 0xd20   :  { %1954 = vmatprep.subr.bf16.mxu0 %v2129_v0  ;;  %v1442_v0 = vld [vmem:[%s2792_s2 + $0x1] ss:$0 sm:$0xff] }
 0xd23   :  { %1955 = vmatpush3.bf16.msra.mxu0 %v2101_v25 }
 0xd6a   :  { %v1210_v59 = vpop.f32.mrb[28].mxu1 }
 0xd6b   :  { %v1216_v26 = vadd.f32 %v1210_v59, %v187_v63  ;;  %v1938_v30 = vpop.f32.mrb[29].mxu1 }
 0xd6c   :  { %v1213_v15 = vpop.f32.mrb[30].mxu1 }
 0xd6d   :  { %v1939_v31 = vpop.f32.mrb[31].mxu1  ;;  %v1217_v32 = vmul.f32 %v1216_v26, %v2259_v37 }
 0xd6f   :  { %2073 = vtanh.f32 %v1217_v32 }
 0xd79   :  { %v2074_v36 = vpop.eup %2073 }
 0xd7a   :  { %v1219_v2 = vmul.f32 %v2074_v36, %v2259_v37 }
 0xd7c   :  { %v1220_v56 = vadd.f32 %v1219_v2, %v2274_v45 }
 0xdd9   :  { %v1151_v3 = vpop.f32.mrb[32].mxu0 }
 0xdda   :  { %v1157_v7 = vmul.f32 %v1151_v3, %v2259_v37  ;;  %v1918_v33 = vpop.f32.mrb[33].mxu0 }
 0xddb   :  { %v1154_v29 = vpop.f32.mrb[34].mxu0 }
 0xddc   :  { %2075 = vtanh.f32 %v1157_v7  ;;  %v1919_v35 = vpop.f32.mrb[35].mxu0 }
 0xde6   :  { %v2076_v4 = vpop.eup %2075 }
 0xde7   :  { %v1159_v6 = vmul.f32 %v2076_v4, %v2259_v37 }
 0xde9   :  { %v1160_v22 = vadd.f32 %v1159_v6, %v2274_v45 }
 0xdeb   :  { %1163 = vrot.lane.b32.xlu1 %v1160_v22, %s2127_s22  ;;  %1161 = vrot.lane.b32.xlu0 %v1160_v22, %s2134_s17 }
 0xdef   :  { %1221 = vrot.lane.b32.xlu1 %v1220_v56, %s2134_s17  ;;  %1165 = vrot.lane.b32.xlu0 %v1160_v22, %s2133_s16 }
 0xdf3   :  { %1225 = vrot.lane.b32.xlu1 %v1220_v56, %s2133_s16  ;;  %1223 = vrot.lane.b32.xlu0 %v1220_v56, %s2127_s22 }
 0xe5d   :  { %v1164_v8 = vpop.permute.xlu1 %1163  ;;  %v1162_v10 = vpop.permute.xlu0 %1161 }
 0xe5e   :  { %v1168_v14 = vmul.f32 %v1164_v8, %v1160_v22  ;;  %v1167_v57 = vmul.f32 %v1162_v10, %v2723_v48 }
 0xe60   :  { %v1169_v17 = vadd.f32 %v1168_v14, %v1167_v57 }
 0xe61   :  { %v1166_v19 = vpop.permute.xlu0 %1165  ;;  %v1222_v46 = vpop.permute.xlu1 %1221 }
 0xe62   :  { %2077 = vtanh.f32 %v1169_v17  ;;  %v1227_v20 = vmul.f32 %v1222_v46, %v2727_v51 }
 0xe65   :  { %v1224_v43 = vpop.permute.xlu0 %1223  ;;  %v1226_v40 = vpop.permute.xlu1 %1225 }
 0xe66   :  { %v1228_v52 = vmul.f32 %v1224_v43, %v1220_v56 }
 0xe68   :  { %v1229_v18 = vadd.f32 %v1228_v52, %v1227_v20 }
 0xe6a   :  { %2079 = vtanh.f32 %v1229_v18 }
 0xe6c   :  { %v2078_v58 = vpop.eup %2077 }
 0xe6d   :  { %v1171_v24 = vmul.f32 %v2078_v58, %v1166_v19 }
 0xe6f   :  { %v1172_v42 = vmul.f32 %v2322_v5, %v1171_v24 }
 0xe71   :  { %1233 = vrot.lane.b32.xlu0 %v1172_v42, %s2133_s16 }
 0xe74   :  { %v2080_v39 = vpop.eup %2079 }
 0xe75   :  { %v1231_v41 = vmul.f32 %v2080_v39, %v1226_v40 }
 0xe77   :  { %v1232_v44 = vmul.f32 %v2322_v5, %v1231_v41 }
 0xee3   :  { %v1234_v47 = vpop.permute.xlu0 %1233 }
 0xee4   :  { %v1235_v48 = vadd.f32 %v1234_v47, %v1232_v44 }
 0xee6   :  { %v1236_v38 = vadd.f32 %v2327_v12, %v1235_v48 }
 0xee8   :  { %v1237_v27 = vpack.c.bf16 %v1236_v38, %v1236_v38 }
 0xeea   :  { %1957 = vmatmul.mubr.bf16.vlgmr.msra.gmra.mrb[36].mxu0 %v1237_v27 }
 0xfbd   :  { %v1272_v51 = vpop.f32.mrb[36].mxu0 }
 0xfbe   :  { %v1278_v53 = vmul.f32 %v1272_v51, %v2259_v37  ;;  %v1958_v28 = vpop.f32.mrb[37].mxu0 }
 0xfbf   :  { %v1275_v54 = vpop.f32.mrb[38].mxu0 }
 0xfc0   :  { %2081 = vtanh.f32 %v1278_v53  ;;  %v1959_v12 = vpop.f32.mrb[39].mxu0 }
 0xfca   :  { %v2082_v60 = vpop.eup %2081 }
 0xfcb   :  { %v1280_v61 = vmul.f32 %v2082_v60, %v2259_v37 }
 0xfcd   :  { %v1281_v62 = vadd.f32 %v1280_v61, %v2274_v45 }
 0xfcf   :  { %1284 = vrot.lane.b32.xlu0 %v1281_v62, %s2127_s22  ;;  %1282 = vrot.lane.b32.xlu1 %v1281_v62, %s2134_s17 }
 0xfd3   :  { %1286 = vrot.lane.b32.xlu1 %v1281_v62, %s2133_s16 }
0x1041   :  { %v1285_v13 = vpop.permute.xlu0 %1284  ;;  %v1283_v1 = vpop.permute.xlu1 %1282 }
0x1042   :  { %v1289_v37 = vmul.f32 %v1285_v13, %v1281_v62  ;;  %v1288_v16 = vmul.f32 %v1283_v1, %v1169_v17 }
0x1044   :  { %v1290_v25 = vadd.f32 %v1289_v37, %v1288_v16 }
0x1045   :  { %v1287_v63 = vpop.permute.xlu1 %1286 }
0x1046   :  { %2083 = vtanh.f32 %v1290_v25 }
0x1050   :  { %v2084_v45 = vpop.eup %2083 }
0x1051   :  { %v1292_v59 = vmul.f32 %v2084_v45, %v1287_v63 }
0x1053   :  { %v1293_v26 = vmul.f32 %v2322_v5, %v1292_v59 }
0x1055   :  { %v1294_v30 = vpack.c.bf16 %v1293_v26, %v1293_v26 }
0x1057   :  { %1977 = vmatmul.mubr.bf16.vlgmr.msra.gmra.mrb[32].mxu1 %v1294_v30 }
0x112a   :  { %v1402_v15 = vpop.f32.mrb[32].mxu1 }
0x112b   :  { %v1403_v31 = vadd.f32 %v1442_v0, %v1402_v15  ;;  %v1978_v32 = vpop.f32.mrb[33].mxu1 }
0x112c   :  { %v1405_v3 = vpop.f32.mrb[34].mxu1 }
0x112d   :  { %1408 = vst [vmem:[%s2793_s3] sm:$0xff] %v1403_v31  ;;  %v1979_v7 = vpop.f32.mrb[35].mxu1 }
0x112e   :  { %1413 = vsyncpa [#allocation4], 1 }

</bundles_post_ra>
